<compile_context>
chip_gen: v7x
topology: tpu7x:2x2x1
jax: 0.10.0
libtpu: 0.0.40
codegen_flags: <defaults>
</compile_context>

<pallas_src>
import functools
import math

import jax
import jax.numpy as jnp
from jax.experimental import pallas as pl
from jax.experimental.pallas import tpu as pltpu

VOCAB = 64
SEQ = 8
WIDTH = 32
HEADS = 4
LAYERS = 2
EMBED_DIM = 32  # output text feature dim

HEAD_DIM = WIDTH // HEADS
PAD = 4 * WIDTH          # lane width of the f32 vector blob (= 128)
ROWS_PER_LAYER = 8       # ln1_g, ln1_b, qkv_b, out_b, ln2_g, ln2_b, fc_b, pj_b


# ------------------------------ fused kernel ------------------------------

def _text_encoder_kernel(
    eot_ref,        # SMEM scalar prefetch: (B,) int32 flat EOT row indices
    x_ref,          # (B*S, W) f32  residual-stream input (embedding + pos)
    w1_ref,         # (L, W, 8W) bf16  per-layer slab [qkv_w | out_w | fc_w]
    w2_ref,         # (L, 4W, W) bf16  c_proj weights
    tp_ref,         # (W, E) bf16      text projection
    vec_ref,        # (8L+2, 4W) f32   LN params + biases, lane-padded rows
    o_ref,          # (B, E) f32       output features
    xs_ref,         # VMEM scratch (B*S, W) f32 for the EOT row gather
    *, num_layers, batch, seq, width, heads):
    head_dim = width // heads
    scale = 1.0 / math.sqrt(head_dim)
    f32, bf16 = jnp.float32, jnp.bfloat16
    w3 = 3 * width

    def layer_norm(v, g, b):
        # E[x^2] - mean^2: both cross-lane reductions issue back-to-back.
        m = jnp.mean(v, axis=-1, keepdims=True)
        m2 = jnp.mean(v * v, axis=-1, keepdims=True)
        var = m2 - m * m
        return (v - m) * jax.lax.rsqrt(var + 1e-5) * g + b

    # Causal mask: built once, shared by every layer / head.
    row = jax.lax.broadcasted_iota(jnp.int32, (seq, seq), 0)
    col = jax.lax.broadcasted_iota(jnp.int32, (seq, seq), 1)
    causal = (col <= row)[None, :, :]                       # (1, S, S)
    masked = jnp.finfo(f32).min

    vecs = vec_ref[...]                                     # read the blob once
    x = x_ref[...]                                          # f32 residual stream

    for l in range(num_layers):                             # statically unrolled
        vb = l * ROWS_PER_LAYER
        w1 = w1_ref[l]                                      # (W, 8W) bf16
        ln1_g = vecs[vb + 0:vb + 1, :width]
        ln1_b = vecs[vb + 1:vb + 2, :width]
        qkv_b = vecs[vb + 2:vb + 3, :w3]
        out_b = vecs[vb + 3:vb + 4, :width]
        ln2_g = vecs[vb + 4:vb + 5, :width]
        ln2_b = vecs[vb + 5:vb + 6, :width]
        fc_b = vecs[vb + 6:vb + 7, :]
        pj_b = vecs[vb + 7:vb + 8, :width]

        # ---- attention block: x = x + out_proj(MHA(ln_1(x))) ----
        h = layer_norm(x, ln1_g, ln1_b).astype(bf16)
        # ONE fused QKV matmul per layer (was 3 * heads tiny matmuls).
        qkv = jnp.dot(h, w1[:, :w3], preferred_element_type=f32) + qkv_b

        # Fold (head, batch) into one leading batch dim -> (H*B, S, D).
        def heads_to_batch(off):
            parts = [qkv[:, off + hd * head_dim: off + (hd + 1) * head_dim]
                     for hd in range(heads)]
            return (jnp.concatenate(parts, axis=0)
                    .reshape(heads * batch, seq, head_dim))

        q = heads_to_batch(0).astype(bf16)
        k = heads_to_batch(width).astype(bf16)
        v = heads_to_batch(2 * width).astype(bf16)

        s = jnp.einsum("nqd,nkd->nqk", q, k,
                       preferred_element_type=f32) * scale  # (H*B, S, S)
        s = jnp.where(causal, s, masked)                    # causal mask
        m = jnp.max(s, axis=-1, keepdims=True)
        p = jnp.exp(s - m)
        p = p * pl.reciprocal(jnp.sum(p, axis=-1, keepdims=True), approx=True)
        o = jnp.einsum("nqk,nkd->nqd", p.astype(bf16), v,
                       preferred_element_type=f32)          # (H*B, S, D)

        # Concatenate heads back along lanes, then ONE out-projection matmul.
        ctx = jnp.concatenate(
            [o[hd * batch:(hd + 1) * batch].reshape(batch * seq, head_dim)
             for hd in range(heads)], axis=-1).astype(bf16)  # (B*S, W)
        attn = jnp.dot(ctx, w1[:, w3:w3 + width], preferred_element_type=f32)
        x = x + attn + out_b

        # ---- MLP block: x = x + c_proj(QuickGELU(c_fc(ln_2(x)))) ----
        h = layer_norm(x, ln2_g, ln2_b).astype(bf16)
        u = jnp.dot(h, w1[:, w3 + width:], preferred_element_type=f32) + fc_b
        u = u * jax.nn.sigmoid(1.702 * u)                   # QuickGELU
        x = x + jnp.dot(u.astype(bf16), w2_ref[l],
                        preferred_element_type=f32) + pj_b

    # ---- final layernorm, EOT gather, text projection, L2 normalize ----
    rowf = num_layers * ROWS_PER_LAYER
    x = layer_norm(x, vecs[rowf:rowf + 1, :width], vecs[rowf + 1:rowf + 2, :width])
    xs_ref[...] = x
    # Dynamic sublane reads of the EOT rows (replaces the one-hot MXU matmul).
    x_eot = jnp.concatenate(
        [xs_ref[pl.ds(eot_ref[b], 1), :] for b in range(batch)], axis=0)  # (B, W)

    y = jnp.dot(x_eot.astype(bf16), tp_ref[...], preferred_element_type=f32)
    ss = jnp.sum(y * y, axis=-1, keepdims=True) + 1e-12     # eps: no NaN
    r = jax.lax.rsqrt(ss)
    r = r * (1.5 - 0.5 * ss * r * r)     # one Newton step -> ~exact unit norm
    o_ref[...] = y * r


# ------------------------------ wrappers ------------------------------

def _pad_lanes(v, n=PAD):
    return jnp.pad(v.astype(jnp.float32), (0, n - v.shape[0]))


def _pack_params(params):
    """Pack per-layer weights into a few blobs so the kernel sees 5 inputs."""
    bf16 = jnp.bfloat16

    def stack(name):
        return jnp.stack([lyr[name] for lyr in params["layers"]])

    # bf16 slab per layer: [qkv_w (W,3W) | out_w (W,W) | fc_w (W,4W)] -> (L, W, 8W)
    w1 = jnp.concatenate([stack("in_w"), stack("out_w"), stack("fc_w")],
                         axis=-1).astype(bf16)
    w2 = stack("proj_w").astype(bf16)                        # (L, 4W, W)
    tp = params["text_projection"].astype(bf16)              # (W, E)

    rows = []
    for lyr in params["layers"]:
        rows += [lyr["ln1_g"], lyr["ln1_b"], lyr["in_b"], lyr["out_b"],
                 lyr["ln2_g"], lyr["ln2_b"], lyr["fc_b"], lyr["proj_b"]]
    rows += [params["lnf_g"], params["lnf_b"]]
    vecs = jnp.stack([_pad_lanes(r) for r in rows])          # (8L+2, 4W) f32

    return w1, w2, tp, vecs


def text_encoder_forward(tokens, params):
    """CLIP encode_text followed by L2 normalization of the features."""
    B, S = tokens.shape
    W, E = WIDTH, EMBED_DIM

    w1, w2, tp, vecs = _pack_params(params)

    # TODO(synk): token-embedding lookup stays as XLA glue (data-dependent HBM
    # gather); the positional add is fused into that same gather output.
    x = (jnp.take(params["token_embedding"], tokens.reshape(-1), axis=0)
         .reshape(B, S, W) + params["positional_embedding"][None, :, :]
         ).reshape(B * S, W).astype(jnp.float32)

    # EOT token (= highest token id) flat row index per batch, scalar-prefetched.
    eot_rows = (jnp.arange(B, dtype=jnp.int32) * S
                + jnp.argmax(tokens, axis=-1).astype(jnp.int32))

    kern = functools.partial(_text_encoder_kernel, num_layers=LAYERS,
                             batch=B, seq=S, width=W, heads=HEADS)

    def full(shape):
        nd = len(shape)
        return pl.BlockSpec(shape, lambda i, e, _n=nd: (0,) * _n)

    inputs = (x, w1, w2, tp, vecs)
    return pl.pallas_call(
        kern,
        out_shape=jax.ShapeDtypeStruct((B, E), jnp.float32),
        grid_spec=pltpu.PrefetchScalarGridSpec(
            num_scalar_prefetch=1,
            grid=(1,),
            in_specs=[full(a.shape) for a in inputs],
            out_specs=pl.BlockSpec((B, E), lambda i, e: (0, 0)),
            scratch_shapes=[pltpu.VMEM((B * S, W), jnp.float32)]),
        compiler_params=pltpu.CompilerParams(
            dimension_semantics=("arbitrary",)),
    )(eot_rows, *inputs)


# ------------------------------ params ------------------------------

def init_params(key):
    def nrm(k, shape, scale=0.02):
        return (scale * jax.random.normal(k, shape)).astype(jnp.float32)

    keys = jax.random.split(key, 3 + LAYERS)
    params = {
        "token_embedding": nrm(keys[0], (VOCAB, WIDTH)),
        "positional_embedding": nrm(keys[1], (SEQ, WIDTH), 0.01),
        "lnf_g": jnp.ones((WIDTH,), jnp.float32),
        "lnf_b": jnp.zeros((WIDTH,), jnp.float32),
        "text_projection": nrm(keys[2], (WIDTH, EMBED_DIM)),
        "layers": [],
    }
    for l in range(LAYERS):
        lk = jax.random.split(keys[3 + l], 8)
        params["layers"].append({
            "ln1_g": jnp.ones((WIDTH,), jnp.float32),
            "ln1_b": jnp.zeros((WIDTH,), jnp.float32),
            # attention projections stored as (in, out): PyTorch weight transposed
            "in_w": nrm(lk[0], (WIDTH, 3 * WIDTH)),
            "in_b": nrm(lk[1], (3 * WIDTH,)),
            "out_w": nrm(lk[2], (WIDTH, WIDTH)),
            "out_b": nrm(lk[3], (WIDTH,)),
            "ln2_g": jnp.ones((WIDTH,), jnp.float32),
            "ln2_b": jnp.zeros((WIDTH,), jnp.float32),
            "fc_w": nrm(lk[4], (WIDTH, 4 * WIDTH)),
            "fc_b": nrm(lk[5], (4 * WIDTH,)),
            "proj_w": nrm(lk[6], (4 * WIDTH, WIDTH)),
            "proj_b": nrm(lk[7], (WIDTH,)),
        })
    return params


# ------------------------------ main ------------------------------

if __name__ == "__main__":
    key = jax.random.PRNGKey(0)
    pkey, tkey = jax.random.split(key)
    params = init_params(pkey)

    B = 2
    tokens = jax.random.randint(tkey, (B, SEQ), minval=1, maxval=VOCAB - 1,
                                dtype=jnp.int32)
    # place the EOT token (highest vocab id) at the end, CLIP-style
    tokens = tokens.at[:, -1].set(VOCAB - 1)

    encode = jax.jit(text_encoder_forward)
    feats = jax.block_until_ready(encode(tokens, params))

    assert feats.shape == (B, EMBED_DIM)
    assert bool(jnp.all(jnp.isfinite(feats)))
    norms = jnp.linalg.norm(feats.astype(jnp.float32), axis=-1)
    assert bool(jnp.all(jnp.abs(norms - 1.0) < 1e-3)), norms
    print("KERNEL_OK")
</pallas_src>

<mosaic_0001>
module attributes {stable_mosaic.version = 11 : i64} {
  func.func @_text_encoder_kernel(%arg0: i32, %arg1: memref<2xi32, #tpu.memory_space<smem>>, %arg2: memref<16x32xf32, #tpu.memory_space<vmem>>, %arg3: memref<2x32x256xbf16, #tpu.memory_space<vmem>>, %arg4: memref<2x128x32xbf16, #tpu.memory_space<vmem>>, %arg5: memref<32x32xbf16, #tpu.memory_space<vmem>>, %arg6: memref<18x128xf32, #tpu.memory_space<vmem>>, %arg7: memref<2x32xf32, #tpu.memory_space<vmem>>, %arg8: memref<16x32xf32, #tpu.memory_space<vmem>>) attributes {dimension_semantics = [#tpu.dimension_semantics<arbitrary>], iteration_bounds = array<i64: 1>, scalar_prefetch = 1 : i64, scratch_operands = 1 : i64, tpu.core_type = #tpu.core_type<tc>, window_params = [{pipeline_mode = #tpu.pipeline_mode<synchronous>, transform_indices = @transform_0, window_bounds = array<i64: 16, 32>}, {pipeline_mode = #tpu.pipeline_mode<synchronous>, transform_indices = @transform_1, window_bounds = array<i64: 2, 32, 256>}, {pipeline_mode = #tpu.pipeline_mode<synchronous>, transform_indices = @transform_2, window_bounds = array<i64: 2, 128, 32>}, {pipeline_mode = #tpu.pipeline_mode<synchronous>, transform_indices = @transform_3, window_bounds = array<i64: 32, 32>}, {pipeline_mode = #tpu.pipeline_mode<synchronous>, transform_indices = @transform_4, window_bounds = array<i64: 18, 128>}, {pipeline_mode = #tpu.pipeline_mode<synchronous>, transform_indices = @transform_5, window_bounds = array<i64: 2, 32>}]} {
    %0 = tpu.iota {dimensions = array<i32: 0>} : vector<8x8xi32>
    %1 = tpu.iota {dimensions = array<i32: 1>} : vector<8x8xi32>
    %2 = arith.cmpi sle, %1, %0 : vector<8x8xi32>
    %3 = vector.shape_cast %2 : vector<8x8xi1> to vector<1x8x8xi1>
    %c0 = arith.constant 0 : index
    %c0_0 = arith.constant 0 : index
    %4 = vector.load %arg6[%c0, %c0_0] : memref<18x128xf32, #tpu.memory_space<vmem>>, vector<18x128xf32>
    %c0_1 = arith.constant 0 : index
    %c0_2 = arith.constant 0 : index
    %5 = vector.load %arg2[%c0_1, %c0_2] : memref<16x32xf32, #tpu.memory_space<vmem>>, vector<16x32xf32>
    %c0_3 = arith.constant 0 : index
    %c0_4 = arith.constant 0 : index
    %c0_5 = arith.constant 0 : index
    %6 = vector.load %arg3[%c0_3, %c0_4, %c0_5] : memref<2x32x256xbf16, #tpu.memory_space<vmem>>, vector<1x32x256xbf16>
    %7 = vector.shape_cast %6 : vector<1x32x256xbf16> to vector<32x256xbf16>
    %8 = vector.extract_strided_slice %4 {offsets = [0, 0], sizes = [1, 32], strides = [1, 1]} : vector<18x128xf32> to vector<1x32xf32>
    %9 = vector.extract_strided_slice %4 {offsets = [1, 0], sizes = [1, 32], strides = [1, 1]} : vector<18x128xf32> to vector<1x32xf32>
    %10 = vector.extract_strided_slice %4 {offsets = [2, 0], sizes = [1, 96], strides = [1, 1]} : vector<18x128xf32> to vector<1x96xf32>
    %11 = vector.extract_strided_slice %4 {offsets = [3, 0], sizes = [1, 32], strides = [1, 1]} : vector<18x128xf32> to vector<1x32xf32>
    %12 = vector.extract_strided_slice %4 {offsets = [4, 0], sizes = [1, 32], strides = [1, 1]} : vector<18x128xf32> to vector<1x32xf32>
    %13 = vector.extract_strided_slice %4 {offsets = [5, 0], sizes = [1, 32], strides = [1, 1]} : vector<18x128xf32> to vector<1x32xf32>
    %14 = vector.extract_strided_slice %4 {offsets = [6, 0], sizes = [1, 128], strides = [1, 1]} : vector<18x128xf32> to vector<1x128xf32>
    %15 = vector.extract_strided_slice %4 {offsets = [7, 0], sizes = [1, 32], strides = [1, 1]} : vector<18x128xf32> to vector<1x32xf32>
    %cst = arith.constant dense<0.000000e+00> : vector<16xf32>
    %16 = vector.multi_reduction <add>, %5, %cst [1] : vector<16x32xf32> to vector<16xf32>
    %17 = vector.shape_cast %16 : vector<16xf32> to vector<16x1xf32>
    %cst_6 = arith.constant 3.200000e+01 : f32
    %18 = vector.broadcast %cst_6 : f32 to vector<16x1xf32>
    %19 = arith.divf %17, %18 : vector<16x1xf32>
    %20 = arith.mulf %5, %5 : vector<16x32xf32>
    %cst_7 = arith.constant dense<0.000000e+00> : vector<16xf32>
    %21 = vector.multi_reduction <add>, %20, %cst_7 [1] : vector<16x32xf32> to vector<16xf32>
    %22 = vector.shape_cast %21 : vector<16xf32> to vector<16x1xf32>
    %cst_8 = arith.constant 3.200000e+01 : f32
    %23 = vector.broadcast %cst_8 : f32 to vector<16x1xf32>
    %24 = arith.divf %22, %23 : vector<16x1xf32>
    %25 = arith.mulf %19, %19 : vector<16x1xf32>
    %26 = arith.subf %24, %25 : vector<16x1xf32>
    %27 = vector.broadcast %19 : vector<16x1xf32> to vector<16x32xf32>
    %28 = arith.subf %5, %27 : vector<16x32xf32>
    %cst_9 = arith.constant 9.99999974E-6 : f32
    %29 = vector.broadcast %cst_9 : f32 to vector<16x1xf32>
    %30 = arith.addf %26, %29 : vector<16x1xf32>
    %31 = math.rsqrt %30 : vector<16x1xf32>
    %32 = vector.broadcast %31 : vector<16x1xf32> to vector<16x32xf32>
    %33 = arith.mulf %28, %32 : vector<16x32xf32>
    %34 = vector.broadcast %8 : vector<1x32xf32> to vector<16x32xf32>
    %35 = arith.mulf %33, %34 : vector<16x32xf32>
    %36 = vector.broadcast %9 : vector<1x32xf32> to vector<16x32xf32>
    %37 = arith.addf %35, %36 : vector<16x32xf32>
    %38 = arith.truncf %37 : vector<16x32xf32> to vector<16x32xbf16>
    %39 = vector.extract_strided_slice %7 {offsets = [0, 0], sizes = [32, 96], strides = [1, 1]} : vector<32x256xbf16> to vector<32x96xbf16>
    %cst_10 = arith.constant dense<0.000000e+00> : vector<16x96xf32>
    %40 = tpu.matmul %38, %39, %cst_10 {dimension_numbers = #tpu.dot_dimension_numbers<[1], [0], [0], [1], [0, 0, 1, 1], [], []>} : vector<16x32xbf16>, vector<32x96xbf16>, vector<16x96xf32> -> vector<16x96xf32>
    %41 = vector.broadcast %10 : vector<1x96xf32> to vector<16x96xf32>
    %42 = arith.addf %40, %41 : vector<16x96xf32>
    %43 = vector.extract_strided_slice %42 {offsets = [0, 0], sizes = [16, 8], strides = [1, 1]} : vector<16x96xf32> to vector<16x8xf32>
    %44 = vector.extract_strided_slice %42 {offsets = [0, 8], sizes = [16, 8], strides = [1, 1]} : vector<16x96xf32> to vector<16x8xf32>
    %45 = vector.extract_strided_slice %42 {offsets = [0, 16], sizes = [16, 8], strides = [1, 1]} : vector<16x96xf32> to vector<16x8xf32>
    %46 = vector.extract_strided_slice %42 {offsets = [0, 24], sizes = [16, 8], strides = [1, 1]} : vector<16x96xf32> to vector<16x8xf32>
    %47 = tpu.concatenate %43, %44, %45, %46 in 0 : vector<16x8xf32>, vector<16x8xf32>, vector<16x8xf32>, vector<16x8xf32> -> vector<64x8xf32>
    %48 = vector.shape_cast %47 : vector<64x8xf32> to vector<8x8x8xf32>
    %49 = arith.truncf %48 : vector<8x8x8xf32> to vector<8x8x8xbf16>
    %50 = vector.extract_strided_slice %42 {offsets = [0, 32], sizes = [16, 8], strides = [1, 1]} : vector<16x96xf32> to vector<16x8xf32>
    %51 = vector.extract_strided_slice %42 {offsets = [0, 40], sizes = [16, 8], strides = [1, 1]} : vector<16x96xf32> to vector<16x8xf32>
    %52 = vector.extract_strided_slice %42 {offsets = [0, 48], sizes = [16, 8], strides = [1, 1]} : vector<16x96xf32> to vector<16x8xf32>
    %53 = vector.extract_strided_slice %42 {offsets = [0, 56], sizes = [16, 8], strides = [1, 1]} : vector<16x96xf32> to vector<16x8xf32>
    %54 = tpu.concatenate %50, %51, %52, %53 in 0 : vector<16x8xf32>, vector<16x8xf32>, vector<16x8xf32>, vector<16x8xf32> -> vector<64x8xf32>
    %55 = vector.shape_cast %54 : vector<64x8xf32> to vector<8x8x8xf32>
    %56 = arith.truncf %55 : vector<8x8x8xf32> to vector<8x8x8xbf16>
    %57 = vector.extract_strided_slice %42 {offsets = [0, 64], sizes = [16, 8], strides = [1, 1]} : vector<16x96xf32> to vector<16x8xf32>
    %58 = vector.extract_strided_slice %42 {offsets = [0, 72], sizes = [16, 8], strides = [1, 1]} : vector<16x96xf32> to vector<16x8xf32>
    %59 = vector.extract_strided_slice %42 {offsets = [0, 80], sizes = [16, 8], strides = [1, 1]} : vector<16x96xf32> to vector<16x8xf32>
    %60 = vector.extract_strided_slice %42 {offsets = [0, 88], sizes = [16, 8], strides = [1, 1]} : vector<16x96xf32> to vector<16x8xf32>
    %61 = tpu.concatenate %57, %58, %59, %60 in 0 : vector<16x8xf32>, vector<16x8xf32>, vector<16x8xf32>, vector<16x8xf32> -> vector<64x8xf32>
    %62 = vector.shape_cast %61 : vector<64x8xf32> to vector<8x8x8xf32>
    %63 = arith.truncf %62 : vector<8x8x8xf32> to vector<8x8x8xbf16>
    "tpu.trace_start"() <{level = 10 : i32, message = "nqd,nkd->nqk"}> : () -> ()
    %cst_11 = arith.constant dense<0.000000e+00> : vector<8x8x8xf32>
    %64 = tpu.matmul %49, %56, %cst_11 {dimension_numbers = #tpu.dot_dimension_numbers<[2], [2], [1], [1], [0, 0, 0, 1, 1, 1], [0], [0]>} : vector<8x8x8xbf16>, vector<8x8x8xbf16>, vector<8x8x8xf32> -> vector<8x8x8xf32>
    "tpu.trace_stop"() : () -> ()
    %cst_12 = arith.constant 0.353553385 : f32
    %65 = vector.broadcast %cst_12 : f32 to vector<8x8x8xf32>
    %66 = arith.mulf %64, %65 : vector<8x8x8xf32>
    %cst_13 = arith.constant -3.40282347E+38 : f32
    %67 = vector.shape_cast %3 : vector<1x8x8xi1> to vector<1x8x8xi1>
    %68 = vector.broadcast %67 : vector<1x8x8xi1> to vector<8x8x8xi1>
    %69 = vector.broadcast %cst_13 : f32 to vector<8x8x8xf32>
    %70 = arith.select %68, %66, %69 : vector<8x8x8xi1>, vector<8x8x8xf32>
    %cst_14 = arith.constant dense<0xFF800000> : vector<8x8xf32>
    %71 = vector.multi_reduction <maximumf>, %70, %cst_14 [2] : vector<8x8x8xf32> to vector<8x8xf32>
    %72 = vector.shape_cast %71 : vector<8x8xf32> to vector<8x8x1xf32>
    %73 = vector.broadcast %72 : vector<8x8x1xf32> to vector<8x8x8xf32>
    %74 = arith.subf %70, %73 : vector<8x8x8xf32>
    %75 = math.exp %74 : vector<8x8x8xf32>
    %cst_15 = arith.constant dense<0.000000e+00> : vector<8x8xf32>
    %76 = vector.multi_reduction <add>, %75, %cst_15 [2] : vector<8x8x8xf32> to vector<8x8xf32>
    %77 = vector.shape_cast %76 : vector<8x8xf32> to vector<8x8x1xf32>
    %78 = tpu.reciprocal %77 {approx = true} : vector<8x8x1xf32> -> vector<8x8x1xf32>
    %79 = vector.broadcast %78 : vector<8x8x1xf32> to vector<8x8x8xf32>
    %80 = arith.mulf %75, %79 : vector<8x8x8xf32>
    %81 = arith.truncf %80 : vector<8x8x8xf32> to vector<8x8x8xbf16>
    "tpu.trace_start"() <{level = 10 : i32, message = "nqk,nkd->nqd"}> : () -> ()
    %cst_16 = arith.constant dense<0.000000e+00> : vector<8x8x8xf32>
    %82 = tpu.matmul %81, %63, %cst_16 {dimension_numbers = #tpu.dot_dimension_numbers<[2], [1], [1], [2], [0, 0, 0, 1, 1, 2], [0], [0]>} : vector<8x8x8xbf16>, vector<8x8x8xbf16>, vector<8x8x8xf32> -> vector<8x8x8xf32>
    "tpu.trace_stop"() : () -> ()
    %83 = vector.extract_strided_slice %82 {offsets = [0, 0, 0], sizes = [2, 8, 8], strides = [1, 1, 1]} : vector<8x8x8xf32> to vector<2x8x8xf32>
    %84 = vector.shape_cast %83 : vector<2x8x8xf32> to vector<16x8xf32>
    %85 = vector.extract_strided_slice %82 {offsets = [2, 0, 0], sizes = [2, 8, 8], strides = [1, 1, 1]} : vector<8x8x8xf32> to vector<2x8x8xf32>
    %86 = vector.shape_cast %85 : vector<2x8x8xf32> to vector<16x8xf32>
    %87 = vector.extract_strided_slice %82 {offsets = [4, 0, 0], sizes = [2, 8, 8], strides = [1, 1, 1]} : vector<8x8x8xf32> to vector<2x8x8xf32>
    %88 = vector.shape_cast %87 : vector<2x8x8xf32> to vector<16x8xf32>
    %89 = vector.extract_strided_slice %82 {offsets = [6, 0, 0], sizes = [2, 8, 8], strides = [1, 1, 1]} : vector<8x8x8xf32> to vector<2x8x8xf32>
    %90 = vector.shape_cast %89 : vector<2x8x8xf32> to vector<16x8xf32>
    %91 = tpu.concatenate %84, %86, %88, %90 in 1 : vector<16x8xf32>, vector<16x8xf32>, vector<16x8xf32>, vector<16x8xf32> -> vector<16x32xf32>
    %92 = arith.truncf %91 : vector<16x32xf32> to vector<16x32xbf16>
    %93 = vector.extract_strided_slice %7 {offsets = [0, 96], sizes = [32, 32], strides = [1, 1]} : vector<32x256xbf16> to vector<32x32xbf16>
    %cst_17 = arith.constant dense<0.000000e+00> : vector<16x32xf32>
    %94 = tpu.matmul %92, %93, %cst_17 {dimension_numbers = #tpu.dot_dimension_numbers<[1], [0], [0], [1], [0, 0, 1, 1], [], []>} : vector<16x32xbf16>, vector<32x32xbf16>, vector<16x32xf32> -> vector<16x32xf32>
    %95 = arith.addf %5, %94 : vector<16x32xf32>
    %96 = vector.broadcast %11 : vector<1x32xf32> to vector<16x32xf32>
    %97 = arith.addf %95, %96 : vector<16x32xf32>
    %cst_18 = arith.constant dense<0.000000e+00> : vector<16xf32>
    %98 = vector.multi_reduction <add>, %97, %cst_18 [1] : vector<16x32xf32> to vector<16xf32>
    %99 = vector.shape_cast %98 : vector<16xf32> to vector<16x1xf32>
    %cst_19 = arith.constant 3.200000e+01 : f32
    %100 = vector.broadcast %cst_19 : f32 to vector<16x1xf32>
    %101 = arith.divf %99, %100 : vector<16x1xf32>
    %102 = arith.mulf %97, %97 : vector<16x32xf32>
    %cst_20 = arith.constant dense<0.000000e+00> : vector<16xf32>
    %103 = vector.multi_reduction <add>, %102, %cst_20 [1] : vector<16x32xf32> to vector<16xf32>
    %104 = vector.shape_cast %103 : vector<16xf32> to vector<16x1xf32>
    %cst_21 = arith.constant 3.200000e+01 : f32
    %105 = vector.broadcast %cst_21 : f32 to vector<16x1xf32>
    %106 = arith.divf %104, %105 : vector<16x1xf32>
    %107 = arith.mulf %101, %101 : vector<16x1xf32>
    %108 = arith.subf %106, %107 : vector<16x1xf32>
    %109 = vector.broadcast %101 : vector<16x1xf32> to vector<16x32xf32>
    %110 = arith.subf %97, %109 : vector<16x32xf32>
    %cst_22 = arith.constant 9.99999974E-6 : f32
    %111 = vector.broadcast %cst_22 : f32 to vector<16x1xf32>
    %112 = arith.addf %108, %111 : vector<16x1xf32>
    %113 = math.rsqrt %112 : vector<16x1xf32>
    %114 = vector.broadcast %113 : vector<16x1xf32> to vector<16x32xf32>
    %115 = arith.mulf %110, %114 : vector<16x32xf32>
    %116 = vector.broadcast %12 : vector<1x32xf32> to vector<16x32xf32>
    %117 = arith.mulf %115, %116 : vector<16x32xf32>
    %118 = vector.broadcast %13 : vector<1x32xf32> to vector<16x32xf32>
    %119 = arith.addf %117, %118 : vector<16x32xf32>
    %120 = arith.truncf %119 : vector<16x32xf32> to vector<16x32xbf16>
    %121 = vector.extract_strided_slice %7 {offsets = [0, 128], sizes = [32, 128], strides = [1, 1]} : vector<32x256xbf16> to vector<32x128xbf16>
    %cst_23 = arith.constant dense<0.000000e+00> : vector<16x128xf32>
    %122 = tpu.matmul %120, %121, %cst_23 {dimension_numbers = #tpu.dot_dimension_numbers<[1], [0], [0], [1], [0, 0, 1, 1], [], []>} : vector<16x32xbf16>, vector<32x128xbf16>, vector<16x128xf32> -> vector<16x128xf32>
    %123 = vector.broadcast %14 : vector<1x128xf32> to vector<16x128xf32>
    %124 = arith.addf %122, %123 : vector<16x128xf32>
    %cst_24 = arith.constant 1.702000e+00 : f32
    %125 = vector.broadcast %cst_24 : f32 to vector<16x128xf32>
    %126 = arith.mulf %125, %124 : vector<16x128xf32>
    %127 = arith.negf %126 : vector<16x128xf32>
    %128 = math.exp %127 : vector<16x128xf32>
    %cst_25 = arith.constant 1.000000e+00 : f32
    %129 = vector.broadcast %cst_25 : f32 to vector<16x128xf32>
    %130 = arith.addf %129, %128 : vector<16x128xf32>
    %131 = arith.divf %129, %130 : vector<16x128xf32>
    %132 = arith.mulf %124, %131 : vector<16x128xf32>
    %133 = arith.truncf %132 : vector<16x128xf32> to vector<16x128xbf16>
    %c0_26 = arith.constant 0 : index
    %c0_27 = arith.constant 0 : index
    %c0_28 = arith.constant 0 : index
    %134 = vector.load %arg4[%c0_26, %c0_27, %c0_28] : memref<2x128x32xbf16, #tpu.memory_space<vmem>>, vector<1x128x32xbf16>
    %135 = vector.shape_cast %134 : vector<1x128x32xbf16> to vector<128x32xbf16>
    %cst_29 = arith.constant dense<0.000000e+00> : vector<16x32xf32>
    %136 = tpu.matmul %133, %135, %cst_29 {dimension_numbers = #tpu.dot_dimension_numbers<[1], [0], [0], [1], [0, 0, 1, 1], [], []>} : vector<16x128xbf16>, vector<128x32xbf16>, vector<16x32xf32> -> vector<16x32xf32>
    %137 = arith.addf %97, %136 : vector<16x32xf32>
    %138 = vector.broadcast %15 : vector<1x32xf32> to vector<16x32xf32>
    %139 = arith.addf %137, %138 : vector<16x32xf32>
    %c1 = arith.constant 1 : index
    %c0_30 = arith.constant 0 : index
    %c0_31 = arith.constant 0 : index
    %140 = vector.load %arg3[%c1, %c0_30, %c0_31] : memref<2x32x256xbf16, #tpu.memory_space<vmem>>, vector<1x32x256xbf16>
    %141 = vector.shape_cast %140 : vector<1x32x256xbf16> to vector<32x256xbf16>
    %142 = vector.extract_strided_slice %4 {offsets = [8, 0], sizes = [1, 32], strides = [1, 1]} : vector<18x128xf32> to vector<1x32xf32>
    %143 = vector.extract_strided_slice %4 {offsets = [9, 0], sizes = [1, 32], strides = [1, 1]} : vector<18x128xf32> to vector<1x32xf32>
    %144 = vector.extract_strided_slice %4 {offsets = [10, 0], sizes = [1, 96], strides = [1, 1]} : vector<18x128xf32> to vector<1x96xf32>
    %145 = vector.extract_strided_slice %4 {offsets = [11, 0], sizes = [1, 32], strides = [1, 1]} : vector<18x128xf32> to vector<1x32xf32>
    %146 = vector.extract_strided_slice %4 {offsets = [12, 0], sizes = [1, 32], strides = [1, 1]} : vector<18x128xf32> to vector<1x32xf32>
    %147 = vector.extract_strided_slice %4 {offsets = [13, 0], sizes = [1, 32], strides = [1, 1]} : vector<18x128xf32> to vector<1x32xf32>
    %148 = vector.extract_strided_slice %4 {offsets = [14, 0], sizes = [1, 128], strides = [1, 1]} : vector<18x128xf32> to vector<1x128xf32>
    %149 = vector.extract_strided_slice %4 {offsets = [15, 0], sizes = [1, 32], strides = [1, 1]} : vector<18x128xf32> to vector<1x32xf32>
    %cst_32 = arith.constant dense<0.000000e+00> : vector<16xf32>
    %150 = vector.multi_reduction <add>, %139, %cst_32 [1] : vector<16x32xf32> to vector<16xf32>
    %151 = vector.shape_cast %150 : vector<16xf32> to vector<16x1xf32>
    %cst_33 = arith.constant 3.200000e+01 : f32
    %152 = vector.broadcast %cst_33 : f32 to vector<16x1xf32>
    %153 = arith.divf %151, %152 : vector<16x1xf32>
    %154 = arith.mulf %139, %139 : vector<16x32xf32>
    %cst_34 = arith.constant dense<0.000000e+00> : vector<16xf32>
    %155 = vector.multi_reduction <add>, %154, %cst_34 [1] : vector<16x32xf32> to vector<16xf32>
    %156 = vector.shape_cast %155 : vector<16xf32> to vector<16x1xf32>
    %cst_35 = arith.constant 3.200000e+01 : f32
    %157 = vector.broadcast %cst_35 : f32 to vector<16x1xf32>
    %158 = arith.divf %156, %157 : vector<16x1xf32>
    %159 = arith.mulf %153, %153 : vector<16x1xf32>
    %160 = arith.subf %158, %159 : vector<16x1xf32>
    %161 = vector.broadcast %153 : vector<16x1xf32> to vector<16x32xf32>
    %162 = arith.subf %139, %161 : vector<16x32xf32>
    %cst_36 = arith.constant 9.99999974E-6 : f32
    %163 = vector.broadcast %cst_36 : f32 to vector<16x1xf32>
    %164 = arith.addf %160, %163 : vector<16x1xf32>
    %165 = math.rsqrt %164 : vector<16x1xf32>
    %166 = vector.broadcast %165 : vector<16x1xf32> to vector<16x32xf32>
    %167 = arith.mulf %162, %166 : vector<16x32xf32>
    %168 = vector.broadcast %142 : vector<1x32xf32> to vector<16x32xf32>
    %169 = arith.mulf %167, %168 : vector<16x32xf32>
    %170 = vector.broadcast %143 : vector<1x32xf32> to vector<16x32xf32>
    %171 = arith.addf %169, %170 : vector<16x32xf32>
    %172 = arith.truncf %171 : vector<16x32xf32> to vector<16x32xbf16>
    %173 = vector.extract_strided_slice %141 {offsets = [0, 0], sizes = [32, 96], strides = [1, 1]} : vector<32x256xbf16> to vector<32x96xbf16>
    %cst_37 = arith.constant dense<0.000000e+00> : vector<16x96xf32>
    %174 = tpu.matmul %172, %173, %cst_37 {dimension_numbers = #tpu.dot_dimension_numbers<[1], [0], [0], [1], [0, 0, 1, 1], [], []>} : vector<16x32xbf16>, vector<32x96xbf16>, vector<16x96xf32> -> vector<16x96xf32>
    %175 = vector.broadcast %144 : vector<1x96xf32> to vector<16x96xf32>
    %176 = arith.addf %174, %175 : vector<16x96xf32>
    %177 = vector.extract_strided_slice %176 {offsets = [0, 0], sizes = [16, 8], strides = [1, 1]} : vector<16x96xf32> to vector<16x8xf32>
    %178 = vector.extract_strided_slice %176 {offsets = [0, 8], sizes = [16, 8], strides = [1, 1]} : vector<16x96xf32> to vector<16x8xf32>
    %179 = vector.extract_strided_slice %176 {offsets = [0, 16], sizes = [16, 8], strides = [1, 1]} : vector<16x96xf32> to vector<16x8xf32>
    %180 = vector.extract_strided_slice %176 {offsets = [0, 24], sizes = [16, 8], strides = [1, 1]} : vector<16x96xf32> to vector<16x8xf32>
    %181 = tpu.concatenate %177, %178, %179, %180 in 0 : vector<16x8xf32>, vector<16x8xf32>, vector<16x8xf32>, vector<16x8xf32> -> vector<64x8xf32>
    %182 = vector.shape_cast %181 : vector<64x8xf32> to vector<8x8x8xf32>
    %183 = arith.truncf %182 : vector<8x8x8xf32> to vector<8x8x8xbf16>
    %184 = vector.extract_strided_slice %176 {offsets = [0, 32], sizes = [16, 8], strides = [1, 1]} : vector<16x96xf32> to vector<16x8xf32>
    %185 = vector.extract_strided_slice %176 {offsets = [0, 40], sizes = [16, 8], strides = [1, 1]} : vector<16x96xf32> to vector<16x8xf32>
    %186 = vector.extract_strided_slice %176 {offsets = [0, 48], sizes = [16, 8], strides = [1, 1]} : vector<16x96xf32> to vector<16x8xf32>
    %187 = vector.extract_strided_slice %176 {offsets = [0, 56], sizes = [16, 8], strides = [1, 1]} : vector<16x96xf32> to vector<16x8xf32>
    %188 = tpu.concatenate %184, %185, %186, %187 in 0 : vector<16x8xf32>, vector<16x8xf32>, vector<16x8xf32>, vector<16x8xf32> -> vector<64x8xf32>
    %189 = vector.shape_cast %188 : vector<64x8xf32> to vector<8x8x8xf32>
    %190 = arith.truncf %189 : vector<8x8x8xf32> to vector<8x8x8xbf16>
    %191 = vector.extract_strided_slice %176 {offsets = [0, 64], sizes = [16, 8], strides = [1, 1]} : vector<16x96xf32> to vector<16x8xf32>
    %192 = vector.extract_strided_slice %176 {offsets = [0, 72], sizes = [16, 8], strides = [1, 1]} : vector<16x96xf32> to vector<16x8xf32>
    %193 = vector.extract_strided_slice %176 {offsets = [0, 80], sizes = [16, 8], strides = [1, 1]} : vector<16x96xf32> to vector<16x8xf32>
    %194 = vector.extract_strided_slice %176 {offsets = [0, 88], sizes = [16, 8], strides = [1, 1]} : vector<16x96xf32> to vector<16x8xf32>
    %195 = tpu.concatenate %191, %192, %193, %194 in 0 : vector<16x8xf32>, vector<16x8xf32>, vector<16x8xf32>, vector<16x8xf32> -> vector<64x8xf32>
    %196 = vector.shape_cast %195 : vector<64x8xf32> to vector<8x8x8xf32>
    %197 = arith.truncf %196 : vector<8x8x8xf32> to vector<8x8x8xbf16>
    "tpu.trace_start"() <{level = 10 : i32, message = "nqd,nkd->nqk"}> : () -> ()
    %cst_38 = arith.constant dense<0.000000e+00> : vector<8x8x8xf32>
    %198 = tpu.matmul %183, %190, %cst_38 {dimension_numbers = #tpu.dot_dimension_numbers<[2], [2], [1], [1], [0, 0, 0, 1, 1, 1], [0], [0]>} : vector<8x8x8xbf16>, vector<8x8x8xbf16>, vector<8x8x8xf32> -> vector<8x8x8xf32>
    "tpu.trace_stop"() : () -> ()
    %cst_39 = arith.constant 0.353553385 : f32
    %199 = vector.broadcast %cst_39 : f32 to vector<8x8x8xf32>
    %200 = arith.mulf %198, %199 : vector<8x8x8xf32>
    %cst_40 = arith.constant -3.40282347E+38 : f32
    %201 = vector.shape_cast %3 : vector<1x8x8xi1> to vector<1x8x8xi1>
    %202 = vector.broadcast %201 : vector<1x8x8xi1> to vector<8x8x8xi1>
    %203 = vector.broadcast %cst_40 : f32 to vector<8x8x8xf32>
    %204 = arith.select %202, %200, %203 : vector<8x8x8xi1>, vector<8x8x8xf32>
    %cst_41 = arith.constant dense<0xFF800000> : vector<8x8xf32>
    %205 = vector.multi_reduction <maximumf>, %204, %cst_41 [2] : vector<8x8x8xf32> to vector<8x8xf32>
    %206 = vector.shape_cast %205 : vector<8x8xf32> to vector<8x8x1xf32>
    %207 = vector.broadcast %206 : vector<8x8x1xf32> to vector<8x8x8xf32>
    %208 = arith.subf %204, %207 : vector<8x8x8xf32>
    %209 = math.exp %208 : vector<8x8x8xf32>
    %cst_42 = arith.constant dense<0.000000e+00> : vector<8x8xf32>
    %210 = vector.multi_reduction <add>, %209, %cst_42 [2] : vector<8x8x8xf32> to vector<8x8xf32>
    %211 = vector.shape_cast %210 : vector<8x8xf32> to vector<8x8x1xf32>
    %212 = tpu.reciprocal %211 {approx = true} : vector<8x8x1xf32> -> vector<8x8x1xf32>
    %213 = vector.broadcast %212 : vector<8x8x1xf32> to vector<8x8x8xf32>
    %214 = arith.mulf %209, %213 : vector<8x8x8xf32>
    %215 = arith.truncf %214 : vector<8x8x8xf32> to vector<8x8x8xbf16>
    "tpu.trace_start"() <{level = 10 : i32, message = "nqk,nkd->nqd"}> : () -> ()
    %cst_43 = arith.constant dense<0.000000e+00> : vector<8x8x8xf32>
    %216 = tpu.matmul %215, %197, %cst_43 {dimension_numbers = #tpu.dot_dimension_numbers<[2], [1], [1], [2], [0, 0, 0, 1, 1, 2], [0], [0]>} : vector<8x8x8xbf16>, vector<8x8x8xbf16>, vector<8x8x8xf32> -> vector<8x8x8xf32>
    "tpu.trace_stop"() : () -> ()
    %217 = vector.extract_strided_slice %216 {offsets = [0, 0, 0], sizes = [2, 8, 8], strides = [1, 1, 1]} : vector<8x8x8xf32> to vector<2x8x8xf32>
    %218 = vector.shape_cast %217 : vector<2x8x8xf32> to vector<16x8xf32>
    %219 = vector.extract_strided_slice %216 {offsets = [2, 0, 0], sizes = [2, 8, 8], strides = [1, 1, 1]} : vector<8x8x8xf32> to vector<2x8x8xf32>
    %220 = vector.shape_cast %219 : vector<2x8x8xf32> to vector<16x8xf32>
    %221 = vector.extract_strided_slice %216 {offsets = [4, 0, 0], sizes = [2, 8, 8], strides = [1, 1, 1]} : vector<8x8x8xf32> to vector<2x8x8xf32>
    %222 = vector.shape_cast %221 : vector<2x8x8xf32> to vector<16x8xf32>
    %223 = vector.extract_strided_slice %216 {offsets = [6, 0, 0], sizes = [2, 8, 8], strides = [1, 1, 1]} : vector<8x8x8xf32> to vector<2x8x8xf32>
    %224 = vector.shape_cast %223 : vector<2x8x8xf32> to vector<16x8xf32>
    %225 = tpu.concatenate %218, %220, %222, %224 in 1 : vector<16x8xf32>, vector<16x8xf32>, vector<16x8xf32>, vector<16x8xf32> -> vector<16x32xf32>
    %226 = arith.truncf %225 : vector<16x32xf32> to vector<16x32xbf16>
    %227 = vector.extract_strided_slice %141 {offsets = [0, 96], sizes = [32, 32], strides = [1, 1]} : vector<32x256xbf16> to vector<32x32xbf16>
    %cst_44 = arith.constant dense<0.000000e+00> : vector<16x32xf32>
    %228 = tpu.matmul %226, %227, %cst_44 {dimension_numbers = #tpu.dot_dimension_numbers<[1], [0], [0], [1], [0, 0, 1, 1], [], []>} : vector<16x32xbf16>, vector<32x32xbf16>, vector<16x32xf32> -> vector<16x32xf32>
    %229 = arith.addf %139, %228 : vector<16x32xf32>
    %230 = vector.broadcast %145 : vector<1x32xf32> to vector<16x32xf32>
    %231 = arith.addf %229, %230 : vector<16x32xf32>
    %cst_45 = arith.constant dense<0.000000e+00> : vector<16xf32>
    %232 = vector.multi_reduction <add>, %231, %cst_45 [1] : vector<16x32xf32> to vector<16xf32>
    %233 = vector.shape_cast %232 : vector<16xf32> to vector<16x1xf32>
    %cst_46 = arith.constant 3.200000e+01 : f32
    %234 = vector.broadcast %cst_46 : f32 to vector<16x1xf32>
    %235 = arith.divf %233, %234 : vector<16x1xf32>
    %236 = arith.mulf %231, %231 : vector<16x32xf32>
    %cst_47 = arith.constant dense<0.000000e+00> : vector<16xf32>
    %237 = vector.multi_reduction <add>, %236, %cst_47 [1] : vector<16x32xf32> to vector<16xf32>
    %238 = vector.shape_cast %237 : vector<16xf32> to vector<16x1xf32>
    %cst_48 = arith.constant 3.200000e+01 : f32
    %239 = vector.broadcast %cst_48 : f32 to vector<16x1xf32>
    %240 = arith.divf %238, %239 : vector<16x1xf32>
    %241 = arith.mulf %235, %235 : vector<16x1xf32>
    %242 = arith.subf %240, %241 : vector<16x1xf32>
    %243 = vector.broadcast %235 : vector<16x1xf32> to vector<16x32xf32>
    %244 = arith.subf %231, %243 : vector<16x32xf32>
    %cst_49 = arith.constant 9.99999974E-6 : f32
    %245 = vector.broadcast %cst_49 : f32 to vector<16x1xf32>
    %246 = arith.addf %242, %245 : vector<16x1xf32>
    %247 = math.rsqrt %246 : vector<16x1xf32>
    %248 = vector.broadcast %247 : vector<16x1xf32> to vector<16x32xf32>
    %249 = arith.mulf %244, %248 : vector<16x32xf32>
    %250 = vector.broadcast %146 : vector<1x32xf32> to vector<16x32xf32>
    %251 = arith.mulf %249, %250 : vector<16x32xf32>
    %252 = vector.broadcast %147 : vector<1x32xf32> to vector<16x32xf32>
    %253 = arith.addf %251, %252 : vector<16x32xf32>
    %254 = arith.truncf %253 : vector<16x32xf32> to vector<16x32xbf16>
    %255 = vector.extract_strided_slice %141 {offsets = [0, 128], sizes = [32, 128], strides = [1, 1]} : vector<32x256xbf16> to vector<32x128xbf16>
    %cst_50 = arith.constant dense<0.000000e+00> : vector<16x128xf32>
    %256 = tpu.matmul %254, %255, %cst_50 {dimension_numbers = #tpu.dot_dimension_numbers<[1], [0], [0], [1], [0, 0, 1, 1], [], []>} : vector<16x32xbf16>, vector<32x128xbf16>, vector<16x128xf32> -> vector<16x128xf32>
    %257 = vector.broadcast %148 : vector<1x128xf32> to vector<16x128xf32>
    %258 = arith.addf %256, %257 : vector<16x128xf32>
    %cst_51 = arith.constant 1.702000e+00 : f32
    %259 = vector.broadcast %cst_51 : f32 to vector<16x128xf32>
    %260 = arith.mulf %259, %258 : vector<16x128xf32>
    %261 = arith.negf %260 : vector<16x128xf32>
    %262 = math.exp %261 : vector<16x128xf32>
    %cst_52 = arith.constant 1.000000e+00 : f32
    %263 = vector.broadcast %cst_52 : f32 to vector<16x128xf32>
    %264 = arith.addf %263, %262 : vector<16x128xf32>
    %265 = arith.divf %263, %264 : vector<16x128xf32>
    %266 = arith.mulf %258, %265 : vector<16x128xf32>
    %267 = arith.truncf %266 : vector<16x128xf32> to vector<16x128xbf16>
    %c1_53 = arith.constant 1 : index
    %c0_54 = arith.constant 0 : index
    %c0_55 = arith.constant 0 : index
    %268 = vector.load %arg4[%c1_53, %c0_54, %c0_55] : memref<2x128x32xbf16, #tpu.memory_space<vmem>>, vector<1x128x32xbf16>
    %269 = vector.shape_cast %268 : vector<1x128x32xbf16> to vector<128x32xbf16>
    %cst_56 = arith.constant dense<0.000000e+00> : vector<16x32xf32>
    %270 = tpu.matmul %267, %269, %cst_56 {dimension_numbers = #tpu.dot_dimension_numbers<[1], [0], [0], [1], [0, 0, 1, 1], [], []>} : vector<16x128xbf16>, vector<128x32xbf16>, vector<16x32xf32> -> vector<16x32xf32>
    %271 = arith.addf %231, %270 : vector<16x32xf32>
    %272 = vector.broadcast %149 : vector<1x32xf32> to vector<16x32xf32>
    %273 = arith.addf %271, %272 : vector<16x32xf32>
    %274 = vector.extract_strided_slice %4 {offsets = [16, 0], sizes = [1, 32], strides = [1, 1]} : vector<18x128xf32> to vector<1x32xf32>
    %275 = vector.extract_strided_slice %4 {offsets = [17, 0], sizes = [1, 32], strides = [1, 1]} : vector<18x128xf32> to vector<1x32xf32>
    %cst_57 = arith.constant dense<0.000000e+00> : vector<16xf32>
    %276 = vector.multi_reduction <add>, %273, %cst_57 [1] : vector<16x32xf32> to vector<16xf32>
    %277 = vector.shape_cast %276 : vector<16xf32> to vector<16x1xf32>
    %cst_58 = arith.constant 3.200000e+01 : f32
    %278 = vector.broadcast %cst_58 : f32 to vector<16x1xf32>
    %279 = arith.divf %277, %278 : vector<16x1xf32>
    %280 = arith.mulf %273, %273 : vector<16x32xf32>
    %cst_59 = arith.constant dense<0.000000e+00> : vector<16xf32>
    %281 = vector.multi_reduction <add>, %280, %cst_59 [1] : vector<16x32xf32> to vector<16xf32>
    %282 = vector.shape_cast %281 : vector<16xf32> to vector<16x1xf32>
    %cst_60 = arith.constant 3.200000e+01 : f32
    %283 = vector.broadcast %cst_60 : f32 to vector<16x1xf32>
    %284 = arith.divf %282, %283 : vector<16x1xf32>
    %285 = arith.mulf %279, %279 : vector<16x1xf32>
    %286 = arith.subf %284, %285 : vector<16x1xf32>
    %287 = vector.broadcast %279 : vector<16x1xf32> to vector<16x32xf32>
    %288 = arith.subf %273, %287 : vector<16x32xf32>
    %cst_61 = arith.constant 9.99999974E-6 : f32
    %289 = vector.broadcast %cst_61 : f32 to vector<16x1xf32>
    %290 = arith.addf %286, %289 : vector<16x1xf32>
    %291 = math.rsqrt %290 : vector<16x1xf32>
    %292 = vector.broadcast %291 : vector<16x1xf32> to vector<16x32xf32>
    %293 = arith.mulf %288, %292 : vector<16x32xf32>
    %294 = vector.broadcast %274 : vector<1x32xf32> to vector<16x32xf32>
    %295 = arith.mulf %293, %294 : vector<16x32xf32>
    %296 = vector.broadcast %275 : vector<1x32xf32> to vector<16x32xf32>
    %297 = arith.addf %295, %296 : vector<16x32xf32>
    %c0_62 = arith.constant 0 : index
    %c0_63 = arith.constant 0 : index
    %298 = vector.load %arg8[%c0_62, %c0_63] : memref<16x32xf32, #tpu.memory_space<vmem>>, vector<16x32xf32>
    tpu.vector_store %arg8[%c0_62, %c0_63], %297 {strides = array<i32>} : memref<16x32xf32, #tpu.memory_space<vmem>>, vector<16x32xf32>,
    %c0_64 = arith.constant 0 : index
    %299 = memref.load %arg1[%c0_64] : memref<2xi32, #tpu.memory_space<smem>>
    %300 = arith.index_cast %299 : i32 to index
    %c0_65 = arith.constant 0 : index
    %301 = vector.load %arg8[%300, %c0_65] : memref<16x32xf32, #tpu.memory_space<vmem>>, vector<1x32xf32>
    %c1_66 = arith.constant 1 : index
    %302 = memref.load %arg1[%c1_66] : memref<2xi32, #tpu.memory_space<smem>>
    %303 = arith.index_cast %302 : i32 to index
    %c0_67 = arith.constant 0 : index
    %304 = vector.load %arg8[%303, %c0_67] : memref<16x32xf32, #tpu.memory_space<vmem>>, vector<1x32xf32>
    %305 = tpu.concatenate %301, %304 in 0 : vector<1x32xf32>, vector<1x32xf32> -> vector<2x32xf32>
    %306 = arith.truncf %305 : vector<2x32xf32> to vector<2x32xbf16>
    %c0_68 = arith.constant 0 : index
    %c0_69 = arith.constant 0 : index
    %307 = vector.load %arg5[%c0_68, %c0_69] : memref<32x32xbf16, #tpu.memory_space<vmem>>, vector<32x32xbf16>
    %cst_70 = arith.constant dense<0.000000e+00> : vector<2x32xf32>
    %308 = tpu.matmul %306, %307, %cst_70 {dimension_numbers = #tpu.dot_dimension_numbers<[1], [0], [0], [1], [0, 0, 1, 1], [], []>} : vector<2x32xbf16>, vector<32x32xbf16>, vector<2x32xf32> -> vector<2x32xf32>
    %309 = arith.mulf %308, %308 : vector<2x32xf32>
    %cst_71 = arith.constant dense<0.000000e+00> : vector<2xf32>
    %310 = vector.multi_reduction <add>, %309, %cst_71 [1] : vector<2x32xf32> to vector<2xf32>
    %311 = vector.shape_cast %310 : vector<2xf32> to vector<2x1xf32>
    %cst_72 = arith.constant 9.99999996E-13 : f32
    %312 = vector.broadcast %cst_72 : f32 to vector<2x1xf32>
    %313 = arith.addf %311, %312 : vector<2x1xf32>
    %314 = math.rsqrt %313 : vector<2x1xf32>
    %cst_73 = arith.constant 5.000000e-01 : f32
    %315 = vector.broadcast %cst_73 : f32 to vector<2x1xf32>
    %316 = arith.mulf %315, %313 : vector<2x1xf32>
    %317 = arith.mulf %316, %314 : vector<2x1xf32>
    %318 = arith.mulf %317, %314 : vector<2x1xf32>
    %cst_74 = arith.constant 1.500000e+00 : f32
    %319 = vector.broadcast %cst_74 : f32 to vector<2x1xf32>
    %320 = arith.subf %319, %318 : vector<2x1xf32>
    %321 = arith.mulf %314, %320 : vector<2x1xf32>
    %322 = vector.broadcast %321 : vector<2x1xf32> to vector<2x32xf32>
    %323 = arith.mulf %308, %322 : vector<2x32xf32>
    %c0_75 = arith.constant 0 : index
    %c0_76 = arith.constant 0 : index
    %324 = vector.load %arg7[%c0_75, %c0_76] : memref<2x32xf32, #tpu.memory_space<vmem>>, vector<2x32xf32>
    tpu.vector_store %arg7[%c0_75, %c0_76], %323 {strides = array<i32>} : memref<2x32xf32, #tpu.memory_space<vmem>>, vector<2x32xf32>,
    return
  }
  func.func @transform_0(%arg0: i32, %arg1: memref<2xi32, #tpu.memory_space<smem>>) -> (i32, i32) {
    %c0_i32 = arith.constant 0 : i32
    %c0_i32_0 = arith.constant 0 : i32
    %c0_i32_1 = arith.constant 0 : i32
    return %c0_i32, %c0_i32_0 : i32, i32
  }
  func.func @transform_1(%arg0: i32, %arg1: memref<2xi32, #tpu.memory_space<smem>>) -> (i32, i32, i32) {
    %c0_i32 = arith.constant 0 : i32
    %c0_i32_0 = arith.constant 0 : i32
    %c0_i32_1 = arith.constant 0 : i32
    %c0_i32_2 = arith.constant 0 : i32
    return %c0_i32, %c0_i32_0, %c0_i32_1 : i32, i32, i32
  }
  func.func @transform_2(%arg0: i32, %arg1: memref<2xi32, #tpu.memory_space<smem>>) -> (i32, i32, i32) {
    %c0_i32 = arith.constant 0 : i32
    %c0_i32_0 = arith.constant 0 : i32
    %c0_i32_1 = arith.constant 0 : i32
    %c0_i32_2 = arith.constant 0 : i32
    return %c0_i32, %c0_i32_0, %c0_i32_1 : i32, i32, i32
  }
  func.func @transform_3(%arg0: i32, %arg1: memref<2xi32, #tpu.memory_space<smem>>) -> (i32, i32) {
    %c0_i32 = arith.constant 0 : i32
    %c0_i32_0 = arith.constant 0 : i32
    %c0_i32_1 = arith.constant 0 : i32
    return %c0_i32, %c0_i32_0 : i32, i32
  }
  func.func @transform_4(%arg0: i32, %arg1: memref<2xi32, #tpu.memory_space<smem>>) -> (i32, i32) {
    %c0_i32 = arith.constant 0 : i32
    %c0_i32_0 = arith.constant 0 : i32
    %c0_i32_1 = arith.constant 0 : i32
    return %c0_i32, %c0_i32_0 : i32, i32
  }
  func.func @transform_5(%arg0: i32, %arg1: memref<2xi32, #tpu.memory_space<smem>>) -> (i32, i32) {
    %c0_i32 = arith.constant 0 : i32
    %c0_i32_0 = arith.constant 0 : i32
    %c0_i32_1 = arith.constant 0 : i32
    return %c0_i32, %c0_i32_0 : i32, i32
  }
}

</mosaic_0001>

<bundles_post_ra>
// kernel: text_encoder_forward.1
= control target key start
LH: loop header
LB: loop body
LE: loop exit
PB: predicated region body
PF: predicated region fallthrough
CT: control target
= control target key end

     0   :  { %s4416_s0 = inlined_call_operand.vmem [shape: s32[2], index: 0, kind: input, shape index: {}]   ;;  %s4417_s1 = inlined_call_operand.vmem [shape: f32[16,32], index: 1, kind: input, shape index: {}]   ;;  %s4418_s2 = inlined_call_operand.vmem [shape: bf16[2,32,256], index: 2, kind: input, shape index: {}]   ;;  %s4419_s3 = inlined_call_operand.vmem [shape: bf16[2,128,32], index: 3, kind: input, shape index: {}]   ;;  %s4420_s4 = inlined_call_operand.vmem [shape: bf16[32,32], index: 4, kind: input, shape index: {}]   ;;  %s4421_s5 = inlined_call_operand.vmem [shape: f32[18,128], index: 5, kind: input, shape index: {}]   ;;  %s4422_s6 = inlined_call_operand.hbm [shape: f32[2,32], index: 6, kind: output, shape index: {}]  }
   0x1   :  { %s11_s23 = sshll.u32 %s4416_s0, 4  ;;  %s12_s23 = int_to_ptr.vmem [resolvable:$true] %s11_s23 }
   0x2   :  { %s3562_s24 = scalar_lea.vmem %s12_s23, 16  ;;  %p3567_p1 = scmp.lt.s32.totalorder %s12_s23, %s12_s23 }
   0x3   :  { %p3563_p0 = scmp.ne.s32.totalorder %s12_s23, %s3562_s24  ;;  %p3568_p2 = scmp.lt.s32.totalorder %s3562_s24, %s3562_s24 }
   0x5   :  { %p3569_p3 = por %p3568_p2, %p3567_p1 }
   0x7   :  { %p3570_p4 = pnand %p3569_p3, %p3563_p0 }
   0x9   :  { %3573 = shalt.err (!%p3570_p4)  }
   0xa   :  { %s3600_s25 = smov [#allocation4]  }
   0xb   :  { %14 = dma.vmem_to_smem %s12_s23, 16, %s3600_s25, [#allocation3] }
   0xc   :  { %3596 = dma.done.wait [#allocation3], 16 }
   0xd   :  { %3597 = vsyncadd [#allocation3], 4294967280 }
   0xe   :  { %16 = sfence }
   0xf   :  { %v3654_v0 = vld [vmem:[%s4417_s1] sm:$0xff]  ;;  %vm43_vm0 = vcmask 261120   ;;  %v3659_v1 = vld [vmem:[%s4417_s1 + $0x8] sm:$0xff] }
  0x10   :  { %v44_v2 = vsel %vm43_vm0, %v3654_v0, 0.0  ;;  %v53_v3 = vmul.f32 %v3654_v0, %v3654_v0  ;;  %v47_v4 = vsel %vm43_vm0, %v3659_v1, 0.0  ;;  %v54_v5 = vmul.f32 %v3659_v1, %v3659_v1 }
  0x11   :  { %45 = vadd.xlane.f32.xlu0 %v44_v2 }
  0x12   :  { %v55_v6 = vsel %vm43_vm0, %v53_v3, 0.0  ;;  %v58_v7 = vsel %vm43_vm0, %v54_v5, 0.0 }
  0x13   :  { %56 = vadd.xlane.f32.xlu1 %v55_v6 }
  0x15   :  { %48 = vadd.xlane.f32.xlu0 %v47_v4 }
  0x17   :  { %59 = vadd.xlane.f32.xlu1 %v58_v7 }
  0x18   :  { %17 = vsyncpa [#allocation6], 0  ;;  %v3674_v8 = vld [vmem:[%s4418_s2] ss:$8 sps:$4 sm:$0xff]   ;;  %v3601_v9 = vmov 0.0   ;;  %vm3602_vm1 = vmmov 0   ;;  %v29_v23 = vlaneseq }
  0x19   :  { %3069 = vmatprep.subr.bf16.mxu1 %v3601_v9  ;;  %3073 = vmatprep.mubr.msk.bf16.mxu1 %vm3602_vm1, %v3601_v9  ;;  %v3683_v10 = vld [vmem:[%s4418_s2 + $0x10] ss:$8 sps:$4 sm:$0xff]   ;;  %v3700_v28 = vld [vmem:[%s4421_s5] sm:$0xff]  ;;  %s3603_s10 = smov 112   ;;  %s3604_s11 = smov 120   ;;  %vm179_vm2 = vcmask 64512  }
  0x1a   :  { %3070 = vmatpush3.bf16.msra.mxu1 %v3674_v8  ;;  %3083 = vmatprep.subr.bf16.mxu0 %v3601_v9  ;;  %v3692_v26 = vshrl.u32 %v29_v23, 7  ;;  %s3605_s12 = smov 104   ;;  %s3606_s13 = smov 96   ;;  %vm688_vm3 = vcmask 1043456   ;;  %vm1094_vm5 = vcmask 130048   ;;  %vm1097_vm6 = vcmask 195584  }
  0x1b   :  { %3071 = vmatprep.subr.bf16.mxu1 %v3601_v9  ;;  %3085 = vmatprep.mubr.msk.bf16.mxu0 %vm3602_vm1, %v3601_v9  ;;  %s3607_s14 = smov 64   ;;  %s3608_s19 = smov 32   ;;  %vm2784_vm7 = vcmask 1040384   ;;  %vm2847_vm8 = vcmask 254976  }
  0x1c   :  { %v3695_v27 = vsub.s32 0, %v3692_v26  ;;  %v3706_v33 = vsub.s32 1, %v3692_v26  ;;  %v90_v43 = vsub.s32 2, %v3692_v26  ;;  %s3609_s20 = smov 8   ;;  %s3610_s21 = smov 16  }
  0x1d   :  { %s3611_s22 = smov 24   ;;  %s2962_s25 = sld [smem:[#allocation4 + $0x1]] }
  0x1e   :  { %3072 = vmatpush3.bf16.msra.mxu1 %v3683_v10  ;;  %v78_v32 = vrot.slane %v3700_v28, %v3695_v27  ;;  %v84_v38 = vrot.slane %v3700_v28, %v3706_v33  ;;  %v91_v44 = vrot.slane %v3700_v28, %v90_v43  ;;  %s2775_s26 = sld [smem:[#allocation4]] }
  0x1f   :  { %3077 = vmatprep.subr.bf16.mxu1 %v3601_v9 }
  0x24   :  { %s2776_s27 = scalar_lea.vmem [#allocation2], %s2775_s26 }
  0x9e   :  { %v46_v11 = vpop.xlane.xlu0 %45 }
  0x9f   :  { %v51_v12 = vmul.f32 0.03125, %v46_v11 }
  0xa0   :  { %v57_v13 = vpop.xlane.xlu1 %56 }
  0xa1   :  { %v63_v14 = vmul.f32 %v51_v12, %v51_v12  ;;  %v61_v15 = vmul.f32 0.03125, %v57_v13  ;;  %v67_v29 = vsub.f32 %v3654_v0, %v51_v12 }
  0xa2   :  { %v49_v16 = vpop.xlane.xlu0 %48 }
  0xa3   :  { %v65_v17 = vsub.f32 %v61_v15, %v63_v14  ;;  %v52_v18 = vmul.f32 0.03125, %v49_v16 }
  0xa4   :  { %v60_v19 = vpop.xlane.xlu1 %59 }
  0xa5   :  { %v69_v20 = vadd.f32 1e-05, %v65_v17  ;;  %v64_v21 = vmul.f32 %v52_v18, %v52_v18  ;;  %v62_v22 = vmul.f32 0.03125, %v60_v19  ;;  %v68_v34 = vsub.f32 %v3659_v1, %v52_v18 }
  0xa7   :  { %3460 = vrsqrt.f32 %v69_v20  ;;  %v66_v24 = vsub.f32 %v62_v22, %v64_v21 }
  0xa9   :  { %v70_v25 = vadd.f32 1e-05, %v66_v24 }
  0xab   :  { %3462 = vrsqrt.f32 %v70_v25 }
  0xb1   :  { %v3461_v30 = vpop.eup %3460 }
  0xb2   :  { %v73_v31 = vmul.f32 %v3461_v30, %v67_v29 }
  0xb4   :  { %v79_v37 = vmul.f32 %v78_v32, %v73_v31 }
  0xb5   :  { %v3463_v35 = vpop.eup %3462 }
  0xb6   :  { %v74_v36 = vmul.f32 %v3463_v35, %v68_v34  ;;  %v85_v40 = vadd.f32 %v84_v38, %v79_v37 }
  0xb8   :  { %v80_v39 = vmul.f32 %v78_v32, %v74_v36  ;;  %v32_v32 = vand.u32 127, %v29_v23 }
  0xba   :  { %v86_v41 = vadd.f32 %v84_v38, %v80_v39  ;;  %vm3802_vm4 = vcmp.le.s32.totalorder %v32_v32, %v3692_v26 }
  0xbc   :  { %v87_v42 = vpack.c.bf16 %v86_v41, %v85_v40 }
  0xbe   :  { %3074 = vmatmul.mubr.msk.bf16.vlgmr.msra.gmra.mrb[0].mxu1 %vm43_vm0, %v87_v42 }
  0xbf   :  { %3079 = vmatprep.mubr.msk.bf16.mxu1 %vm3602_vm1, %v3601_v9 }
 0x191   :  { %v141_v45 = vpop.f32.mrb[0].mxu1 }
 0x192   :  { %v3075_v46 = vpop.f32.mrb[1].mxu1  ;;  %v142_v48 = vadd.f32 %v141_v45, %v91_v44 }
 0x193   :  { %v144_v47 = vpop.f32.mrb[2].mxu1 }
 0x194   :  { %v145_v49 = vadd.f32 %v144_v47, %v91_v44  ;;  %v3076_v50 = vpop.f32.mrb[3].mxu1  ;;  %v168_v53 = vpack.c.bf16 %v142_v48, %v142_v48 }
 0x196   :  { %v3375_v51 = vpack.i.bf16 %v145_v49, %v142_v48  ;;  %v3720_v52 = vpack.c.bf16 %v145_v49, %v145_v49 }
 0x198   :  { %3376 = vrot.lane.b32.xlu1 %v3375_v51, %s3603_s10  ;;  %3371 = vrot.lane.b32.xlu0 %v3375_v51, %s3604_s11 }
 0x19c   :  { %3381 = vrot.lane.b32.xlu1 %v3375_v51, %s3605_s12  ;;  %227 = vrot.lane.b32.xlu0 %v3720_v52, %s3606_s13 }
 0x1a0   :  { %177 = vrot.lane.b32.xlu1 %v168_v53, %s3606_s13 }
 0x20a   :  { %v3377_v54 = vpop.permute.xlu1 %3376  ;;  %v3372_v55 = vpop.permute.xlu0 %3371 }
 0x20b   :  { %v3374_v56 = vunpack.i.h.bf16 %v3372_v55  ;;  %v3373_v57 = vunpack.i.l.bf16 %v3372_v55  ;;  %v3379_v58 = vunpack.i.h.bf16 %v3377_v54  ;;  %v3378_v59 = vunpack.i.l.bf16 %v3377_v54 }
 0x20d   :  { %v3726_v60 = vpack.c.bf16 %v3374_v56, %v3374_v56  ;;  %v3728_v61 = vpack.c.bf16 %v3373_v57, %v3373_v57  ;;  %v3735_v3 = vpack.c.bf16 %v3379_v58, %v3379_v58  ;;  %v3737_v4 = vpack.c.bf16 %v3378_v59, %v3378_v59 }
 0x20e   :  { %v3382_v62 = vpop.permute.xlu1 %3381  ;;  %v228_v63 = vpop.permute.xlu0 %227 }
 0x20f   :  { %276 = vrot.lane.b32.xlu1 %v3728_v61, %s3606_s13  ;;  %325 = vrot.lane.b32.xlu0 %v3726_v60, %s3606_s13  ;;  %v233_v2 = vsel %vm179_vm2, %v228_v63, 0  ;;  %v3384_v5 = vunpack.i.h.bf16 %v3382_v62  ;;  %v3383_v6 = vunpack.i.l.bf16 %v3382_v62 }
 0x210   :  { %3084 = vmatpush3.bf16.xpose.msra.mxu0 %v233_v2 }
 0x211   :  { %3095 = vmatprep.subr.bf16.mxu0 %v3601_v9  ;;  %v3745_v12 = vpack.c.bf16 %v3384_v5, %v3384_v5  ;;  %v3747_v13 = vpack.c.bf16 %v3383_v6, %v3383_v6 }
 0x212   :  { %v178_v7 = vpop.permute.xlu1 %177 }
 0x213   :  { %v184_v11 = vsel %vm179_vm2, %v178_v7, 0  ;;  %374 = vrot.lane.b32.xlu1 %v3737_v4, %s3606_s13  ;;  %423 = vrot.lane.b32.xlu0 %v3735_v3, %s3606_s13 }
 0x214   :  { %3078 = vmatpush3.bf16.xpose.msra.mxu1 %v184_v11 }
 0x215   :  { %3089 = vmatprep.subr.bf16.mxu1 %v3601_v9 }
 0x217   :  { %472 = vrot.lane.b32.xlu1 %v3747_v13, %s3606_s13  ;;  %521 = vrot.lane.b32.xlu0 %v3745_v12, %s3606_s13 }
 0x218   :  { %3086 = vmatmul.mubr.msk.bf16.vlgmr.msra.gmra.mrb[0].mxu0 %vm179_vm2, %v3720_v52 }
 0x219   :  { %3097 = vmatprep.mubr.msk.bf16.mxu0 %vm3602_vm1, %v3601_v9 }
 0x21b   :  { %3080 = vmatmul.mubr.msk.bf16.vlgmr.msra.gmra.mrb[4].mxu1 %vm179_vm2, %v168_v53  ;;  %683 = vrot.lane.b32.xlu1 %v168_v53, %s3607_s14 }
 0x21c   :  { %3091 = vmatprep.mubr.msk.bf16.mxu1 %vm3602_vm1, %v3601_v9 }
 0x281   :  { %v277_v14 = vpop.permute.xlu1 %276  ;;  %v326_v15 = vpop.permute.xlu0 %325 }
 0x282   :  { %v282_v16 = vsel %vm179_vm2, %v277_v14, 0  ;;  %v331_v17 = vsel %vm179_vm2, %v326_v15, 0 }
 0x283   :  { %3090 = vmatpush3.bf16.xpose.msra.mxu1 %v282_v16  ;;  %3096 = vmatpush3.bf16.xpose.msra.mxu0 %v331_v17 }
 0x284   :  { %3101 = vmatprep.subr.bf16.mxu1 %v3601_v9  ;;  %3107 = vmatprep.subr.bf16.mxu0 %v3601_v9 }
 0x285   :  { %v375_v18 = vpop.permute.xlu1 %374  ;;  %v424_v19 = vpop.permute.xlu0 %423 }
 0x286   :  { %v380_v20 = vsel %vm179_vm2, %v375_v18, 0  ;;  %v429_v21 = vsel %vm179_vm2, %v424_v19, 0 }
 0x289   :  { %v473_v22 = vpop.permute.xlu1 %472  ;;  %v522_v24 = vpop.permute.xlu0 %521 }
 0x28a   :  { %3092 = vmatmul.mubr.msk.bf16.vlgmr.msra.gmra.mrb[8].mxu1 %vm179_vm2, %v3728_v61  ;;  %3098 = vmatmul.mubr.msk.bf16.vlgmr.msra.gmra.mrb[4].mxu0 %vm179_vm2, %v3726_v60  ;;  %v478_v25 = vsel %vm179_vm2, %v473_v22, 0  ;;  %v527_v29 = vsel %vm179_vm2, %v522_v24, 0 }
 0x28b   :  { %3102 = vmatpush3.bf16.xpose.msra.mxu1 %v380_v20  ;;  %3108 = vmatpush3.bf16.xpose.msra.mxu0 %v429_v21 }
 0x28c   :  { %3103 = vmatprep.mubr.msk.bf16.mxu1 %vm3602_vm1, %v3601_v9  ;;  %3109 = vmatprep.mubr.msk.bf16.mxu0 %vm3602_vm1, %v3601_v9 }
 0x28d   :  { %3113 = vmatprep.subr.bf16.mxu1 %v3601_v9  ;;  %3119 = vmatprep.subr.bf16.mxu0 %v3601_v9  ;;  %v684_v30 = vpop.permute.xlu1 %683 }
 0x28e   :  { %v690_v31 = vsel %vm688_vm3, %v684_v30, 0 }
 0x292   :  { %3104 = vmatmul.mubr.msk.bf16.vlgmr.msra.gmra.mrb[12].mxu1 %vm179_vm2, %v3737_v4  ;;  %3110 = vmatmul.mubr.msk.bf16.vlgmr.msra.gmra.mrb[8].mxu0 %vm179_vm2, %v3735_v3 }
 0x293   :  { %3114 = vmatpush3.bf16.xpose.msra.mxu1 %v478_v25  ;;  %3120 = vmatpush3.bf16.xpose.msra.mxu0 %v527_v29 }
 0x294   :  { %3115 = vmatprep.mubr.msk.bf16.mxu1 %vm3602_vm1, %v3601_v9  ;;  %3121 = vmatprep.mubr.msk.bf16.mxu0 %vm3602_vm1, %v3601_v9 }
 0x295   :  { %3125 = vmatprep.subr.bf16.mxu1 %v3601_v9  ;;  %3131 = vmatprep.subr.bf16.mxu0 %v3601_v9 }
 0x29a   :  { %3116 = vmatmul.mubr.msk.bf16.vlgmr.msra.gmra.mrb[16].mxu1 %vm179_vm2, %v3747_v13  ;;  %3122 = vmatmul.mubr.msk.bf16.vlgmr.msra.gmra.mrb[12].mxu0 %vm179_vm2, %v3745_v12 }
 0x29b   :  { %3126 = vmatpush3.bf16.msra.mxu1 %v690_v31  ;;  %3133 = vmatprep.mubr.msk.bf16.mxu0 %vm3602_vm1, %v3601_v9 }
 0x29c   :  { %3127 = vmatprep.mubr.msk.bf16.mxu1 %vm3602_vm1, %v3601_v9  ;;  %3137 = vmatprep.subr.bf16.mxu1 %v3601_v9 }
 0x2eb   :  { %v269_v35 = vpop.f32.mrb[0].mxu0 }
 0x2ec   :  { %v570_v36 = vmul.f32 0.35355338, %v269_v35  ;;  %v3087_v37 = vpop.f32.mrb[1].mxu0 }
 0x2ed   :  { %v272_v38 = vpop.f32.mrb[2].mxu0 }
 0x2ee   :  { %v3088_v39 = vpop.f32.mrb[3].mxu0  ;;  %v220_v40 = vpop.f32.mrb[4].mxu1  ;;  %v3808_v41 = vsel %vm3802_vm4, %v570_v36, -3.4028235e+38 }
 0x2ef   :  { %v569_v42 = vmul.f32 0.35355338, %v220_v40  ;;  %v3081_v44 = vpop.f32.mrb[5].mxu1  ;;  %v590_v23 = vsel %vm179_vm2, %v3808_v41, -inf }
 0x2f0   :  { %591 = vmax.xlane.f32.xlu0 %v590_v23  ;;  %v223_v45 = vpop.f32.mrb[6].mxu1 }
 0x2f1   :  { %v3082_v46 = vpop.f32.mrb[7].mxu1  ;;  %v579_v47 = vsel %vm3802_vm4, %v569_v42, -3.4028235e+38 }
 0x2f2   :  { %v587_v48 = vsel %vm179_vm2, %v579_v47, -inf }
 0x2f3   :  { %588 = vmax.xlane.f32.xlu1 %v587_v48 }
 0x35d   :  { %v318_v49 = vpop.f32.mrb[8].mxu1  ;;  %v367_v50 = vpop.f32.mrb[4].mxu0 }
 0x35e   :  { %v571_v51 = vmul.f32 0.35355338, %v318_v49  ;;  %v572_v53 = vmul.f32 0.35355338, %v367_v50  ;;  %v3093_v54 = vpop.f32.mrb[9].mxu1  ;;  %v3099_v55 = vpop.f32.mrb[5].mxu0 }
 0x35f   :  { %v321_v56 = vpop.f32.mrb[10].mxu1  ;;  %v370_v57 = vpop.f32.mrb[6].mxu0 }
 0x360   :  { %v3094_v58 = vpop.f32.mrb[11].mxu1  ;;  %v3100_v59 = vpop.f32.mrb[7].mxu0  ;;  %v581_v62 = vsel %vm3802_vm4, %v571_v51, -3.4028235e+38  ;;  %v582_v2 = vsel %vm3802_vm4, %v572_v53, -3.4028235e+38 }
 0x361   :  { %v593_v63 = vsel %vm179_vm2, %v581_v62, -inf  ;;  %v596_v7 = vsel %vm179_vm2, %v582_v2, -inf }
 0x362   :  { %594 = vmax.xlane.f32.xlu0 %v593_v63 }
 0x365   :  { %v416_v5 = vpop.f32.mrb[12].mxu1  ;;  %v465_v6 = vpop.f32.mrb[8].mxu0 }
 0x366   :  { %v573_v11 = vmul.f32 0.35355338, %v416_v5  ;;  %v574_v14 = vmul.f32 0.35355338, %v465_v6  ;;  %v3105_v15 = vpop.f32.mrb[13].mxu1  ;;  %v3111_v16 = vpop.f32.mrb[9].mxu0  ;;  %597 = vmax.xlane.f32.xlu0 %v596_v7 }
 0x367   :  { %v419_v17 = vpop.f32.mrb[14].mxu1  ;;  %v468_v18 = vpop.f32.mrb[10].mxu0 }
 0x368   :  { %v3106_v19 = vpop.f32.mrb[15].mxu1  ;;  %v3112_v20 = vpop.f32.mrb[11].mxu0  ;;  %v3823_v21 = vsel %vm3802_vm4, %v574_v14, -3.4028235e+38  ;;  %v583_v22 = vsel %vm3802_vm4, %v573_v11, -3.4028235e+38 }
 0x369   :  { %v602_v24 = vsel %vm179_vm2, %v3823_v21, -inf  ;;  %v599_v25 = vsel %vm179_vm2, %v583_v22, -inf }
 0x36a   :  { %603 = vmax.xlane.f32.xlu0 %v602_v24  ;;  %600 = vmax.xlane.f32.xlu1 %v599_v25 }
 0x36d   :  { %v514_v29 = vpop.f32.mrb[16].mxu1  ;;  %v563_v30 = vpop.f32.mrb[12].mxu0 }
 0x36e   :  { %v575_v31 = vmul.f32 0.35355338, %v514_v29  ;;  %v576_v32 = vmul.f32 0.35355338, %v563_v30  ;;  %v3117_v35 = vpop.f32.mrb[17].mxu1  ;;  %v3123_v36 = vpop.f32.mrb[13].mxu0 }
 0x36f   :  { %v517_v37 = vpop.f32.mrb[18].mxu1  ;;  %v566_v38 = vpop.f32.mrb[14].mxu0 }
 0x370   :  { %v3118_v39 = vpop.f32.mrb[19].mxu1  ;;  %v3124_v40 = vpop.f32.mrb[15].mxu0  ;;  %v3832_v42 = vsel %vm3802_vm4, %v576_v32, -3.4028235e+38  ;;  %v585_v44 = vsel %vm3802_vm4, %v575_v31, -3.4028235e+38 }
 0x371   :  { %v608_v23 = vsel %vm179_vm2, %v3832_v42, -inf  ;;  %v605_v45 = vsel %vm179_vm2, %v585_v44, -inf }
 0x372   :  { %609 = vmax.xlane.f32.xlu0 %v608_v23  ;;  %606 = vmax.xlane.f32.xlu1 %v605_v45 }
 0x37d   :  { %v592_v46 = vpop.xlane.xlu0 %591 }
 0x37e   :  { %v612_v48 = vsub.f32 %v3808_v41, %v592_v46 }
 0x380   :  { %v589_v49 = vpop.xlane.xlu1 %588  ;;  %v621_v50 = vmul.f32 1.442695, %v612_v48 }
 0x381   :  { %v611_v51 = vsub.f32 %v579_v47, %v589_v49 }
 0x382   :  { %3464 = vpow2.f32 %v621_v50 }
 0x383   :  { %780 = vrot.lane.b32.xlu1 %v3728_v61, %s3607_s14  ;;  %v619_v53 = vmul.f32 1.442695, %v611_v51 }
 0x385   :  { %3466 = vpow2.f32 %v619_v53 }
 0x387   :  { %828 = vrot.lane.b32.xlu1 %v3726_v60, %s3607_s14 }
 0x388   :  { %732 = vrot.lane.b32.xlu0 %v3720_v52, %s3607_s14 }
 0x38c   :  { %v3465_v54 = vpop.eup %3464 }
 0x38d   :  { %v638_v55 = vsel %vm179_vm2, %v3465_v54, 0.0 }
 0x38f   :  { %v3847_v56 = vpop.eup %3466 }
 0x390   :  { %v635_v60 = vsel %vm179_vm2, %v3847_v56, 0.0 }
 0x3a7   :  { %639 = vadd.xlane.f32.xlu0 %v638_v55 }
 0x3ab   :  { %636 = vadd.xlane.f32.xlu1 %v635_v60 }
 0x3bc   :  { %876 = vrot.lane.b32.xlu1 %v3737_v4, %s3607_s14 }
 0x3ef   :  { %v595_v52 = vpop.xlane.xlu0 %594 }
 0x3f0   :  { %v613_v61 = vsub.f32 %v581_v62, %v595_v52 }
 0x3f2   :  { %v623_v41 = vmul.f32 1.442695, %v613_v61 }
 0x3f3   :  { %v598_v47 = vpop.xlane.xlu0 %597 }
 0x3f4   :  { %3468 = vpow2.f32 %v623_v41  ;;  %v614_v57 = vsub.f32 %v582_v2, %v598_v47 }
 0x3f6   :  { %v625_v58 = vmul.f32 1.442695, %v614_v57 }
 0x3f7   :  { %v601_v59 = vpop.xlane.xlu1 %600  ;;  %v604_v6 = vpop.xlane.xlu0 %603 }
 0x3f8   :  { %3470 = vpow2.f32 %v625_v58  ;;  %v615_v63 = vsub.f32 %v583_v22, %v601_v59  ;;  %v616_v25 = vsub.f32 %v3823_v21, %v604_v6 }
 0x3fa   :  { %v627_v5 = vmul.f32 1.442695, %v615_v63  ;;  %v629_v29 = vmul.f32 1.442695, %v616_v25  ;;  %v3435_v25 = vld [vmem:[%s4418_s2 + $0x14] ss:$8 sps:$4 sm:$0xff]  }
 0x3fc   :  { %3472 = vpow2.f32 %v627_v5 }
 0x3fe   :  { %v3853_v7 = vpop.eup %3468 }
 0x3ff   :  { %v610_v11 = vpop.xlane.xlu0 %609  ;;  %v607_v14 = vpop.xlane.xlu1 %606  ;;  %v641_v4 = vsel %vm179_vm2, %v3853_v7, 0.0 }
 0x400   :  { %v617_v15 = vsub.f32 %v585_v44, %v607_v14  ;;  %642 = vadd.xlane.f32.xlu1 %v641_v4  ;;  %v618_v30 = vsub.f32 %v3832_v42, %v610_v11 }
 0x402   :  { %v3857_v62 = vpop.eup %3470  ;;  %v631_v16 = vmul.f32 1.442695, %v617_v15  ;;  %v633_v31 = vmul.f32 1.442695, %v618_v30 }
 0x403   :  { %v733_v2 = vpop.permute.xlu0 %732  ;;  %v644_v17 = vsel %vm179_vm2, %v3857_v62, 0.0  ;;  %v781_v32 = vpop.permute.xlu1 %780 }
 0x404   :  { %v738_v18 = vsel %vm688_vm3, %v733_v2, 0  ;;  %645 = vadd.xlane.f32.xlu0 %v644_v17  ;;  %3474 = vpow2.f32 %v631_v16  ;;  %v786_v48 = vsel %vm688_vm3, %v781_v32, 0 }
 0x405   :  { %3132 = vmatpush3.bf16.msra.mxu0 %v738_v18  ;;  %3476 = vpow2.f32 %v629_v29 }
 0x406   :  { %3143 = vmatprep.subr.bf16.mxu0 %v3601_v9  ;;  %v3863_v19 = vpop.eup %3472  ;;  %3478 = vpow2.f32 %v633_v31 }
 0x407   :  { %v647_v20 = vsel %vm179_vm2, %v3863_v19, 0.0  ;;  %v829_v35 = vpop.permute.xlu1 %828 }
 0x408   :  { %648 = vadd.xlane.f32.xlu1 %v647_v20  ;;  %v834_v23 = vsel %vm688_vm3, %v829_v35, 0 }
 0x40e   :  { %v3867_v22 = vpop.eup %3474 }
 0x40f   :  { %v653_v24 = vsel %vm179_vm2, %v3867_v22, 0.0  ;;  %v3877_v37 = vpop.eup %3476 }
 0x410   :  { %654 = vadd.xlane.f32.xlu1 %v653_v24  ;;  %v3881_v39 = vpop.eup %3478 }
 0x41a   :  { %924 = vrot.lane.b32.xlu0 %v3735_v3, %s3607_s14  ;;  %v650_v3 = vsel %vm179_vm2, %v3877_v37, 0.0 }
 0x421   :  { %972 = vrot.lane.b32.xlu1 %v3747_v13, %s3607_s14  ;;  %v656_v13 = vsel %vm179_vm2, %v3881_v39, 0.0 }
 0x425   :  { %1101 = vrot.lane.b32.xlu1 %v3674_v8, %s3608_s19 }
 0x434   :  { %v640_v36 = vpop.xlane.xlu0 %639 }
 0x435   :  { %3480 = vrcp.f32 %v640_v36 }
 0x438   :  { %v637_v38 = vpop.xlane.xlu1 %636 }
 0x439   :  { %3482 = vrcp.f32 %v637_v38  ;;  %651 = vadd.xlane.f32.xlu0 %v650_v3 }
 0x43c   :  { %v877_v49 = vpop.permute.xlu1 %876 }
 0x43d   :  { %657 = vadd.xlane.f32.xlu0 %v656_v13  ;;  %v882_v52 = vsel %vm688_vm3, %v877_v49, 0 }
 0x43f   :  { %v3481_v21 = vpop.eup %3480 }
 0x440   :  { %v668_v40 = vmul.f32 %v3481_v21, %v3465_v54 }
 0x442   :  { %v676_v42 = vpack.c.bf16 %v668_v40, %v668_v40 }
 0x443   :  { %v3483_v44 = vpop.eup %3482 }
 0x444   :  { %v667_v45 = vmul.f32 %v3483_v44, %v3847_v56  ;;  %3134 = vmatmul.mubr.msk.bf16.vlgmr.msra.gmra.mrb[16].mxu0 %vm179_vm2, %v676_v42 }
 0x445   :  { %3144 = vmatpush3.bf16.msra.mxu0 %v834_v23  ;;  %3145 = vmatprep.mubr.msk.bf16.mxu0 %vm3602_vm1, %v3601_v9 }
 0x446   :  { %v675_v46 = vpack.c.bf16 %v667_v45, %v667_v45  ;;  %3155 = vmatprep.subr.bf16.mxu0 %v3601_v9 }
 0x448   :  { %3128 = vmatmul.mubr.msk.bf16.vlgmr.msra.gmra.mrb[20].mxu1 %vm179_vm2, %v675_v46 }
 0x449   :  { %3138 = vmatpush3.bf16.msra.mxu1 %v786_v48  ;;  %3139 = vmatprep.mubr.msk.bf16.mxu1 %vm3602_vm1, %v3601_v9 }
 0x44a   :  { %3149 = vmatprep.subr.bf16.mxu1 %v3601_v9 }
 0x453   :  { %1020 = vrot.lane.b32.xlu0 %v3745_v12, %s3607_s14 }
 0x48d   :  { %v643_v50 = vpop.xlane.xlu1 %642 }
 0x48e   :  { %3484 = vrcp.f32 %v643_v50 }
 0x491   :  { %v646_v51 = vpop.xlane.xlu0 %645 }
 0x492   :  { %3486 = vrcp.f32 %v646_v51 }
 0x495   :  { %v649_v53 = vpop.xlane.xlu1 %648  ;;  %v925_v41 = vpop.permute.xlu0 %924 }
 0x496   :  { %3488 = vrcp.f32 %v649_v53  ;;  %v930_v58 = vsel %vm688_vm3, %v925_v41, 0 }
 0x498   :  { %v3485_v54 = vpop.eup %3484 }
 0x499   :  { %v669_v55 = vmul.f32 %v3485_v54, %v3853_v7 }
 0x49b   :  { %v677_v56 = vpack.c.bf16 %v669_v55, %v669_v55 }
 0x49c   :  { %v3487_v60 = vpop.eup %3486 }
 0x49d   :  { %v670_v61 = vmul.f32 %v3487_v60, %v3857_v62  ;;  %3140 = vmatmul.mubr.msk.bf16.vlgmr.msra.gmra.mrb[24].mxu1 %vm179_vm2, %v677_v56  ;;  %v655_v12 = vpop.xlane.xlu1 %654 }
 0x49e   :  { %3150 = vmatpush3.bf16.msra.mxu1 %v882_v52  ;;  %3151 = vmatprep.mubr.msk.bf16.mxu1 %vm3602_vm1, %v3601_v9  ;;  %3490 = vrcp.f32 %v655_v12 }
 0x49f   :  { %v678_v47 = vpack.c.bf16 %v670_v61, %v670_v61  ;;  %3161 = vmatprep.subr.bf16.mxu1 %v3601_v9 }
 0x4a0   :  { %v3489_v57 = vpop.eup %3488 }
 0x4a1   :  { %3146 = vmatmul.mubr.msk.bf16.vlgmr.msra.gmra.mrb[20].mxu0 %vm179_vm2, %v678_v47  ;;  %v671_v59 = vmul.f32 %v3489_v57, %v3863_v19  ;;  %v973_v63 = vpop.permute.xlu1 %972 }
 0x4a2   :  { %3156 = vmatpush3.bf16.msra.mxu0 %v930_v58  ;;  %3157 = vmatprep.mubr.msk.bf16.mxu0 %vm3602_vm1, %v3601_v9  ;;  %v978_v6 = vsel %vm688_vm3, %v973_v63, 0 }
 0x4a3   :  { %3167 = vmatprep.subr.bf16.mxu0 %v3601_v9  ;;  %v679_v5 = vpack.c.bf16 %v671_v59, %v671_v59 }
 0x4a5   :  { %3152 = vmatmul.mubr.msk.bf16.vlgmr.msra.gmra.mrb[28].mxu1 %vm179_vm2, %v679_v5  ;;  %v1102_v8 = vpop.permute.xlu1 %1101 }
 0x4a6   :  { %3162 = vmatpush3.bf16.msra.mxu1 %v978_v6  ;;  %3163 = vmatprep.mubr.msk.bf16.mxu1 %vm3602_vm1, %v3601_v9 }
 0x4a7   :  { %3173 = vmatprep.subr.bf16.mxu1 %v3601_v9 }
 0x4a8   :  { %v3491_v7 = vpop.eup %3490 }
 0x4a9   :  { %v673_v11 = vmul.f32 %v3491_v7, %v3867_v22  ;;  %v3432_v22 = vld [vmem:[%s4418_s2 + $0x4] ss:$8 sps:$4 sm:$0xff]  }
 0x4ab   :  { %v681_v14 = vpack.c.bf16 %v673_v11, %v673_v11 }
 0x4ad   :  { %3164 = vmatmul.mubr.msk.bf16.vlgmr.msra.gmra.mrb[32].mxu1 %vm179_vm2, %v681_v14 }
 0x4ae   :  { %3177 = vmatprep.mubr.msk.bf16.mxu1 %vm3602_vm1, %v3601_v9  ;;  %3174 = vmatpush3.bf16.msra.mxu1 %v1102_v8 }
 0x4af   :  { %3175 = vmatprep.subr.bf16.mxu1 %v3601_v9 }
 0x4c6   :  { %v652_v4 = vpop.xlane.xlu0 %651 }
 0x4c7   :  { %3492 = vrcp.f32 %v652_v4 }
 0x4ca   :  { %v658_v15 = vpop.xlane.xlu0 %657 }
 0x4cb   :  { %3494 = vrcp.f32 %v658_v15 }
 0x4ce   :  { %v1021_v2 = vpop.permute.xlu0 %1020 }
 0x4cf   :  { %v1026_v19 = vsel %vm688_vm3, %v1021_v2, 0 }
 0x4d1   :  { %v3493_v62 = vpop.eup %3492 }
 0x4d2   :  { %v672_v16 = vmul.f32 %v3493_v62, %v3877_v37 }
 0x4d4   :  { %v680_v17 = vpack.c.bf16 %v672_v16, %v672_v16 }
 0x4d5   :  { %v3495_v18 = vpop.eup %3494 }
 0x4d6   :  { %3158 = vmatmul.mubr.msk.bf16.vlgmr.msra.gmra.mrb[24].mxu0 %vm179_vm2, %v680_v17  ;;  %v674_v20 = vmul.f32 %v3495_v18, %v3881_v39 }
 0x4d7   :  { %3168 = vmatpush3.bf16.msra.mxu0 %v1026_v19  ;;  %3169 = vmatprep.mubr.msk.bf16.mxu0 %vm3602_vm1, %v3601_v9 }
 0x4d8   :  { %3181 = vmatprep.subr.bf16.mxu0 %v3601_v9  ;;  %v682_v24 = vpack.c.bf16 %v674_v20, %v674_v20 }
 0x4de   :  { %3170 = vmatmul.mubr.msk.bf16.vlgmr.msra.gmra.mrb[28].mxu0 %vm179_vm2, %v682_v24  ;;  %v1155_v24 = vsub.s32 3, %v3692_v26 }
 0x4df   :  { %3182 = vmatpush3.bf16.msra.mxu0 %v3432_v22  ;;  %3185 = vmatprep.mubr.msk.bf16.mxu0 %vm3602_vm1, %v3601_v9 }
 0x4e0   :  { %3183 = vmatprep.subr.bf16.mxu0 %v3601_v9 }
 0x4e3   :  { %3184 = vmatpush3.bf16.msra.mxu0 %v3435_v25  ;;  %v1156_v25 = vrot.slane %v3700_v28, %v1155_v24 }
 0x4e4   :  { %3209 = vmatprep.subr.bf16.mxu0 %v3601_v9 }
 0x517   :  { %v774_v29 = vpop.f32.mrb[16].mxu0 }
 0x518   :  { %v3135_v30 = vpop.f32.mrb[17].mxu0 }
 0x519   :  { %v777_v31 = vpop.f32.mrb[18].mxu0 }
 0x51a   :  { %v3136_v32 = vpop.f32.mrb[19].mxu0 }
 0x51b   :  { %v726_v35 = vpop.f32.mrb[20].mxu1 }
 0x51c   :  { %v3129_v36 = vpop.f32.mrb[21].mxu1 }
 0x51d   :  { %v729_v37 = vpop.f32.mrb[22].mxu1 }
 0x51e   :  { %v3130_v38 = vpop.f32.mrb[23].mxu1 }
 0x570   :  { %v822_v3 = vpop.f32.mrb[24].mxu1 }
 0x571   :  { %v3141_v39 = vpop.f32.mrb[25].mxu1 }
 0x572   :  { %v825_v13 = vpop.f32.mrb[26].mxu1 }
 0x573   :  { %v3142_v21 = vpop.f32.mrb[27].mxu1 }
 0x574   :  { %v870_v40 = vpop.f32.mrb[20].mxu0 }
 0x575   :  { %v3385_v42 = vpack.i.bf16 %v870_v40, %v822_v3  ;;  %v3147_v44 = vpop.f32.mrb[21].mxu0 }
 0x576   :  { %v873_v23 = vpop.f32.mrb[22].mxu0 }
 0x577   :  { %v3148_v45 = vpop.f32.mrb[23].mxu0  ;;  %3386 = vrot.lane.b32.xlu0 %v3385_v42, %s3609_s20 }
 0x578   :  { %v918_v46 = vpop.f32.mrb[28].mxu1 }
 0x579   :  { %v3153_v48 = vpop.f32.mrb[29].mxu1 }
 0x57a   :  { %v921_v49 = vpop.f32.mrb[30].mxu1 }
 0x57b   :  { %v3154_v50 = vpop.f32.mrb[31].mxu1 }
 0x580   :  { %v1014_v51 = vpop.f32.mrb[32].mxu1 }
 0x581   :  { %v3165_v53 = vpop.f32.mrb[33].mxu1 }
 0x582   :  { %v1017_v54 = vpop.f32.mrb[34].mxu1 }
 0x583   :  { %v3166_v55 = vpop.f32.mrb[35].mxu1 }
 0x5a9   :  { %v966_v56 = vpop.f32.mrb[24].mxu0 }
 0x5aa   :  { %v3390_v60 = vpack.i.bf16 %v966_v56, %v918_v46  ;;  %v3159_v52 = vpop.f32.mrb[25].mxu0  ;;  %v1191_v56 = vsub.s32 4, %v3692_v26 }
 0x5ab   :  { %v969_v61 = vpop.f32.mrb[26].mxu0 }
 0x5ac   :  { %v3160_v41 = vpop.f32.mrb[27].mxu0  ;;  %3391 = vrot.lane.b32.xlu1 %v3390_v60, %s3610_s21 }
 0x5ad   :  { %v1192_v41 = vrot.slane %v3700_v28, %v1191_v56 }
 0x5b0   :  { %1103 = vrot.lane.b32.xlu1 %v3683_v10, %s3608_s19 }
 0x5b1   :  { %v1062_v12 = vpop.f32.mrb[28].mxu0 }
 0x5b2   :  { %v3395_v47 = vpack.i.bf16 %v1062_v12, %v1014_v51  ;;  %v3171_v57 = vpop.f32.mrb[29].mxu0  ;;  %v1197_v12 = vsub.s32 5, %v3692_v26 }
 0x5b3   :  { %v1065_v58 = vpop.f32.mrb[30].mxu0 }
 0x5b4   :  { %v3172_v59 = vpop.f32.mrb[31].mxu0  ;;  %3396 = vrot.lane.b32.xlu0 %v3395_v47, %s3611_s22 }
 0x5e9   :  { %v3387_v5 = vpop.permute.xlu0 %3386 }
 0x5ea   :  { %v3389_v7 = vunpack.i.h.bf16 %v3387_v5  ;;  %v3388_v11 = vunpack.i.l.bf16 %v3387_v5 }
 0x5ec   :  { %v1093_v15 = vsel %vm179_vm2, %v774_v29, %v3389_v7  ;;  %v1092_v62 = vsel %vm179_vm2, %v726_v35, %v3388_v11 }
 0x61e   :  { %v3392_v63 = vpop.permute.xlu1 %3391 }
 0x61f   :  { %v3394_v14 = vunpack.i.h.bf16 %v3392_v63  ;;  %v3393_v4 = vunpack.i.l.bf16 %v3392_v63  ;;  %v1198_v63 = vrot.slane %v3700_v28, %v1197_v12 }
 0x621   :  { %v1096_v17 = vsel %vm1094_vm5, %v1093_v15, %v3394_v14  ;;  %v1095_v18 = vsel %vm1094_vm5, %v1092_v62, %v3393_v4  ;;  %v3436_v14 = vld [vmem:[%s4419_s3] sm:$0xff]   ;;  %v3437_v4 = vld [vmem:[%s4419_s3 + $0x8] sm:$0xff]   ;;  %v3439_v15 = vld [vmem:[%s4419_s3 + $0x18] sm:$0xff]  }
 0x622   :  { %v1104_v6 = vpop.permute.xlu1 %1103  ;;  %v3440_v62 = vld [vmem:[%s4419_s3 + $0x20] sm:$0xff]  }
 0x623   :  { %3176 = vmatpush3.bf16.msra.mxu1 %v1104_v6 }
 0x624   :  { %3189 = vmatprep.subr.bf16.mxu1 %v3601_v9 }
 0x626   :  { %v3397_v10 = vpop.permute.xlu0 %3396 }
 0x627   :  { %v3399_v16 = vunpack.i.h.bf16 %v3397_v10  ;;  %v3398_v2 = vunpack.i.l.bf16 %v3397_v10  ;;  %v3438_v10 = vld [vmem:[%s4419_s3 + $0x10] sm:$0xff]  }
 0x629   :  { %v1098_v19 = vsel %vm1097_vm6, %v1095_v18, %v3398_v2  ;;  %v1099_v20 = vsel %vm1097_vm6, %v1096_v17, %v3399_v16  ;;  %v3441_v16 = vld [vmem:[%s4419_s3 + $0x28] sm:$0xff]   ;;  %v3442_v2 = vld [vmem:[%s4419_s3 + $0x30] sm:$0xff]   ;;  %v3443_v17 = vld [vmem:[%s4419_s3 + $0x38] sm:$0xff]   ;;  %v1204_v18 = vsub.s32 6, %v3692_v26 }
 0x62a   :  { %v1100_v22 = vpack.c.bf16 %v1099_v20, %v1098_v19 }
 0x62b   :  { %v1205_v19 = vrot.slane %v3700_v28, %v1204_v18 }
 0x62c   :  { %3178 = vmatmul.mubr.msk.bf16.vlgmr.msra.gmra.mrb[36].mxu1 %vm43_vm0, %v1100_v22 }
 0x62d   :  { %3205 = vmatprep.mubr.msk.bf16.mxu1 %vm3602_vm1, %v3601_v9  ;;  %3190 = vmatpush3.bf16.msra.mxu1 %v3436_v14 }
 0x62e   :  { %3191 = vmatprep.subr.bf16.mxu1 %v3601_v9 }
 0x631   :  { %3192 = vmatpush3.bf16.msra.mxu1 %v3437_v4 }
 0x632   :  { %3193 = vmatprep.subr.bf16.mxu1 %v3601_v9 }
 0x635   :  { %3194 = vmatpush3.bf16.msra.mxu1 %v3438_v10 }
 0x636   :  { %3195 = vmatprep.subr.bf16.mxu1 %v3601_v9 }
 0x639   :  { %3196 = vmatpush3.bf16.msra.mxu1 %v3439_v15 }
 0x63a   :  { %3197 = vmatprep.subr.bf16.mxu1 %v3601_v9 }
 0x63d   :  { %3198 = vmatpush3.bf16.msra.mxu1 %v3440_v62 }
 0x63e   :  { %3199 = vmatprep.subr.bf16.mxu1 %v3601_v9 }
 0x641   :  { %3200 = vmatpush3.bf16.msra.mxu1 %v3441_v16 }
 0x642   :  { %3201 = vmatprep.subr.bf16.mxu1 %v3601_v9 }
 0x645   :  { %3202 = vmatpush3.bf16.msra.mxu1 %v3442_v2  ;;  %v4064_v2 = vld [vmem:[%s4421_s5 + $0x8] sm:$0xff] }
 0x646   :  { %3203 = vmatprep.subr.bf16.mxu1 %v3601_v9 }
 0x649   :  { %3204 = vmatpush3.bf16.msra.mxu1 %v3443_v17 }
 0x64a   :  { %3235 = vmatprep.subr.bf16.mxu1 %v3601_v9 }
 0x6ff   :  { %v1144_v29 = vpop.f32.mrb[36].mxu1 }
 0x700   :  { %v1151_v30 = vadd.f32 %v1144_v29, %v3654_v0  ;;  %v3179_v31 = vpop.f32.mrb[37].mxu1 }
 0x701   :  { %v1147_v32 = vpop.f32.mrb[38].mxu1 }
 0x702   :  { %v3961_v35 = vadd.f32 %v1156_v25, %v1151_v30  ;;  %v1152_v36 = vadd.f32 %v1147_v32, %v3659_v1  ;;  %v3180_v37 = vpop.f32.mrb[39].mxu1 }
 0x704   :  { %v3964_v38 = vadd.f32 %v1156_v25, %v1152_v36  ;;  %v1159_v3 = vsel %vm43_vm0, %v3961_v35, 0.0  ;;  %v1167_v39 = vmul.f32 %v3961_v35, %v3961_v35 }
 0x705   :  { %1160 = vadd.xlane.f32.xlu0 %v1159_v3 }
 0x706   :  { %v1162_v13 = vsel %vm43_vm0, %v3964_v38, 0.0  ;;  %v1169_v0 = vsel %vm43_vm0, %v1167_v39, 0.0  ;;  %v1168_v21 = vmul.f32 %v3964_v38, %v3964_v38 }
 0x707   :  { %1163 = vadd.xlane.f32.xlu1 %v1162_v13 }
 0x708   :  { %v1172_v1 = vsel %vm43_vm0, %v1168_v21, 0.0 }
 0x709   :  { %1170 = vadd.xlane.f32.xlu0 %v1169_v0 }
 0x70d   :  { %1173 = vadd.xlane.f32.xlu0 %v1172_v1 }
 0x792   :  { %v1161_v40 = vpop.xlane.xlu0 %1160 }
 0x793   :  { %v1165_v42 = vmul.f32 0.03125, %v1161_v40 }
 0x794   :  { %v1164_v44 = vpop.xlane.xlu1 %1163 }
 0x795   :  { %v1177_v45 = vmul.f32 %v1165_v42, %v1165_v42  ;;  %v1166_v8 = vmul.f32 0.03125, %v1164_v44  ;;  %v1181_v60 = vsub.f32 %v3961_v35, %v1165_v42 }
 0x796   :  { %v1171_v23 = vpop.xlane.xlu0 %1170 }
 0x797   :  { %v1175_v46 = vmul.f32 0.03125, %v1171_v23  ;;  %v1178_v50 = vmul.f32 %v1166_v8, %v1166_v8  ;;  %v1182_v47 = vsub.f32 %v3964_v38, %v1166_v8 }
 0x799   :  { %v1179_v48 = vsub.f32 %v1175_v46, %v1177_v45  ;;  %v1384_v45 = vsub.s32 7, %v3692_v26 }
 0x79a   :  { %v1174_v49 = vpop.xlane.xlu0 %1173 }
 0x79b   :  { %v1183_v51 = vadd.f32 1e-05, %v1179_v48  ;;  %v1176_v53 = vmul.f32 0.03125, %v1174_v49  ;;  %v1385_v8 = vrot.slane %v3700_v28, %v1384_v45 }
 0x79d   :  { %3496 = vrsqrt.f32 %v1183_v51  ;;  %v1180_v54 = vsub.f32 %v1176_v53, %v1178_v50 }
 0x79f   :  { %v1184_v55 = vadd.f32 1e-05, %v1180_v54 }
 0x7a1   :  { %3498 = vrsqrt.f32 %v1184_v55 }
 0x7a7   :  { %v3497_v52 = vpop.eup %3496 }
 0x7a8   :  { %v1187_v61 = vmul.f32 %v3497_v52, %v1181_v60 }
 0x7aa   :  { %v1193_v59 = vmul.f32 %v1192_v41, %v1187_v61 }
 0x7ab   :  { %v3499_v57 = vpop.eup %3498 }
 0x7ac   :  { %v1188_v58 = vmul.f32 %v3499_v57, %v1182_v47  ;;  %v1199_v6 = vadd.f32 %v1198_v63, %v1193_v59  ;;  %v4056_v47 = vld [vmem:[%s4418_s2 + $0x30] ss:$8 sps:$4 sm:$0xff]  }
 0x7ae   :  { %v1194_v5 = vmul.f32 %v1192_v41, %v1188_v58  ;;  %v4050_v41 = vld [vmem:[%s4418_s2 + $0x20] ss:$8 sps:$4 sm:$0xff]  }
 0x7b0   :  { %v1200_v7 = vadd.f32 %v1198_v63, %v1194_v5 }
 0x7b2   :  { %v1201_v11 = vpack.c.bf16 %v1200_v7, %v1199_v6 }
 0x7b4   :  { %3186 = vmatmul.mubr.msk.bf16.vlgmr.msra.gmra.mrb[32].mxu0 %vm43_vm0, %v1201_v11 }
 0x7b5   :  { %3213 = vmatprep.mubr.msk.bf16.mxu0 %vm3602_vm1, %v3601_v9  ;;  %3210 = vmatpush3.bf16.msra.mxu0 %v4050_v41 }
 0x7b6   :  { %3211 = vmatprep.subr.bf16.mxu0 %v3601_v9 }
 0x7b9   :  { %3212 = vmatpush3.bf16.msra.mxu0 %v4056_v47 }
 0x7ba   :  { %3217 = vmatprep.subr.bf16.mxu0 %v3601_v9 }
 0x887   :  { %v1251_v20 = vpop.f32.mrb[32].mxu0 }
 0x888   :  { %v1252_v22 = vadd.f32 %v1251_v20, %v1205_v19  ;;  %v3187_v25 = vpop.f32.mrb[33].mxu0 }
 0x889   :  { %v1254_v29 = vpop.f32.mrb[34].mxu0 }
 0x88a   :  { %v2899_v30 = vmul.f32 -1.702, %v1252_v22  ;;  %v1255_v31 = vadd.f32 %v1254_v29, %v1205_v19  ;;  %v3188_v32 = vpop.f32.mrb[35].mxu0  ;;  %v1426_v19 = vrot.slane %v4064_v2, %v3695_v27 }
 0x88b   :  { %v1432_v32 = vrot.slane %v4064_v2, %v3706_v33 }
 0x88c   :  { %v1262_v36 = vmul.f32 1.442695, %v2899_v30  ;;  %v2900_v37 = vmul.f32 -1.702, %v1255_v31 }
 0x88e   :  { %3500 = vpow2.f32 %v1262_v36  ;;  %v1264_v3 = vmul.f32 1.442695, %v2900_v37 }
 0x890   :  { %3502 = vpow2.f32 %v1264_v3 }
 0x898   :  { %v3501_v39 = vpop.eup %3500 }
 0x899   :  { %v1266_v13 = vadd.f32 1.0, %v3501_v39 }
 0x89a   :  { %v3503_v0 = vpop.eup %3502 }
 0x89b   :  { %3504 = vrcp.f32 %v1266_v13  ;;  %v1267_v21 = vadd.f32 1.0, %v3503_v0  ;;  %v1439_v13 = vrot.slane %v4064_v2, %v90_v43 }
 0x89d   :  { %3506 = vrcp.f32 %v1267_v21 }
 0x8a5   :  { %v3505_v1 = vpop.eup %3504 }
 0x8a6   :  { %v1272_v42 = vmul.f32 %v3505_v1, %v1252_v22 }
 0x8a7   :  { %v3507_v40 = vpop.eup %3506 }
 0x8a8   :  { %v1273_v44 = vmul.f32 %v3507_v40, %v1255_v31 }
 0x8aa   :  { %v1274_v23 = vpack.c.bf16 %v1273_v44, %v1272_v42 }
 0x8ac   :  { %3206 = vmatmul.mubr.bf16.vlgmr.msra.gmra.mrb[40].mxu1 %v1274_v23 }
 0x8ad   :  { %3237 = vmatprep.mubr.msk.bf16.mxu1 %vm3602_vm1, %v3601_v9 }
 0x97f   :  { %v1373_v46 = vpop.f32.mrb[40].mxu1 }
 0x980   :  { %v1380_v48 = vadd.f32 %v1373_v46, %v3961_v35  ;;  %v3207_v49 = vpop.f32.mrb[41].mxu1 }
 0x981   :  { %v1376_v50 = vpop.f32.mrb[42].mxu1 }
 0x982   :  { %v4032_v51 = vadd.f32 %v1385_v8, %v1380_v48  ;;  %v1381_v53 = vadd.f32 %v1376_v50, %v3964_v38  ;;  %v3208_v54 = vpop.f32.mrb[43].mxu1 }
 0x984   :  { %v4035_v55 = vadd.f32 %v1385_v8, %v1381_v53  ;;  %v1393_v60 = vsel %vm43_vm0, %v4032_v51, 0.0  ;;  %v1401_v52 = vmul.f32 %v4032_v51, %v4032_v51 }
 0x985   :  { %1394 = vadd.xlane.f32.xlu0 %v1393_v60 }
 0x986   :  { %v1396_v28 = vsel %vm43_vm0, %v4035_v55, 0.0  ;;  %v1402_v35 = vmul.f32 %v4035_v55, %v4035_v55  ;;  %v1403_v61 = vsel %vm43_vm0, %v1401_v52, 0.0 }
 0x987   :  { %1397 = vadd.xlane.f32.xlu1 %v1396_v28 }
 0x988   :  { %v1406_v38 = vsel %vm43_vm0, %v1402_v35, 0.0 }
 0x989   :  { %1404 = vadd.xlane.f32.xlu0 %v1403_v61 }
 0x98b   :  { %1407 = vadd.xlane.f32.xlu1 %v1406_v38 }
 0xa12   :  { %v1395_v57 = vpop.xlane.xlu0 %1394 }
 0xa13   :  { %v1399_v58 = vmul.f32 0.03125, %v1395_v57 }
 0xa14   :  { %v1398_v59 = vpop.xlane.xlu1 %1397 }
 0xa15   :  { %v1400_v63 = vmul.f32 0.03125, %v1398_v59  ;;  %v1411_v6 = vmul.f32 %v1399_v58, %v1399_v58  ;;  %v1415_v17 = vsub.f32 %v4032_v51, %v1399_v58 }
 0xa16   :  { %v1405_v5 = vpop.xlane.xlu0 %1404 }
 0xa17   :  { %v1409_v7 = vmul.f32 0.03125, %v1405_v5  ;;  %v1412_v14 = vmul.f32 %v1400_v63, %v1400_v63  ;;  %v1416_v22 = vsub.f32 %v4035_v55, %v1400_v63 }
 0xa18   :  { %v1408_v11 = vpop.xlane.xlu1 %1407 }
 0xa19   :  { %v1413_v4 = vsub.f32 %v1409_v7, %v1411_v6  ;;  %v1410_v10 = vmul.f32 0.03125, %v1408_v11 }
 0xa1b   :  { %v1417_v15 = vadd.f32 1e-05, %v1413_v4  ;;  %v1414_v62 = vsub.f32 %v1410_v10, %v1412_v14 }
 0xa1d   :  { %3508 = vrsqrt.f32 %v1417_v15  ;;  %v1418_v16 = vadd.f32 1e-05, %v1414_v62 }
 0xa1f   :  { %3510 = vrsqrt.f32 %v1418_v16 }
 0xa27   :  { %v3509_v20 = vpop.eup %3508 }
 0xa28   :  { %v1421_v25 = vmul.f32 %v3509_v20, %v1415_v17 }
 0xa29   :  { %v3511_v29 = vpop.eup %3510 }
 0xa2a   :  { %v1422_v30 = vmul.f32 %v3511_v29, %v1416_v22  ;;  %v1427_v31 = vmul.f32 %v1426_v19, %v1421_v25 }
 0xa2c   :  { %v1428_v36 = vmul.f32 %v1426_v19, %v1422_v30  ;;  %v1433_v37 = vadd.f32 %v1432_v32, %v1427_v31 }
 0xa2e   :  { %v1434_v3 = vadd.f32 %v1432_v32, %v1428_v36 }
 0xa30   :  { %v1435_v39 = vpack.c.bf16 %v1434_v3, %v1433_v37 }
 0xa32   :  { %3214 = vmatmul.mubr.msk.bf16.vlgmr.msra.gmra.mrb[36].mxu0 %vm43_vm0, %v1435_v39 }
 0xa33   :  { %3219 = vmatprep.mubr.msk.bf16.mxu0 %vm3602_vm1, %v3601_v9 }
 0xb05   :  { %v1489_v0 = vpop.f32.mrb[36].mxu0 }
 0xb06   :  { %v3215_v21 = vpop.f32.mrb[37].mxu0  ;;  %v1490_v40 = vadd.f32 %v1489_v0, %v1439_v13 }
 0xb07   :  { %v1492_v1 = vpop.f32.mrb[38].mxu0 }
 0xb08   :  { %v1493_v42 = vadd.f32 %v1492_v1, %v1439_v13  ;;  %v3216_v44 = vpop.f32.mrb[39].mxu0  ;;  %v1516_v46 = vpack.c.bf16 %v1490_v40, %v1490_v40 }
 0xb0a   :  { %v3405_v23 = vpack.i.bf16 %v1493_v42, %v1490_v40  ;;  %v4080_v8 = vpack.c.bf16 %v1493_v42, %v1493_v42 }
 0xb0c   :  { %3406 = vrot.lane.b32.xlu1 %v3405_v23, %s3603_s10  ;;  %3401 = vrot.lane.b32.xlu0 %v3405_v23, %s3604_s11  ;;  %s3612_s10 = smov [#allocation5]  }
 0xb0d   :  { %s2866_s11 = sshll.u32 %s3612_s10, 4  ;;  %s2867_s11 = int_to_ptr.vmem [resolvable:$true] %s2866_s11 }
 0xb0e   :  { %p3579_p6 = scmp.lt.s32.totalorder %s2867_s11, %s2867_s11 }
 0xb10   :  { %3411 = vrot.lane.b32.xlu1 %v3405_v23, %s3605_s12  ;;  %1574 = vrot.lane.b32.xlu0 %v4080_v8, %s3606_s13  ;;  %s3574_s12 = scalar_lea.vmem %s2867_s11, 32 }
 0xb11   :  { %p3575_p5 = scmp.ne.s32.totalorder %s2867_s11, %s3574_s12  ;;  %p3580_p7 = scmp.lt.s32.totalorder %s3574_s12, %s3574_s12 }
 0xb13   :  { %p3581_p8 = por %p3580_p7, %p3579_p6 }
 0xb14   :  { %1525 = vrot.lane.b32.xlu1 %v1516_v46, %s3606_s13 }
 0xb15   :  { %p3582_p9 = pnand %p3581_p8, %p3575_p5 }
 0xb7e   :  { %v3407_v43 = vpop.permute.xlu1 %3406  ;;  %v3402_v48 = vpop.permute.xlu0 %3401 }
 0xb7f   :  { %v3404_v49 = vunpack.i.h.bf16 %v3402_v48  ;;  %v3403_v50 = vunpack.i.l.bf16 %v3402_v48  ;;  %v3409_v53 = vunpack.i.h.bf16 %v3407_v43  ;;  %v3408_v54 = vunpack.i.l.bf16 %v3407_v43 }
 0xb81   :  { %v4086_v60 = vpack.c.bf16 %v3404_v49, %v3404_v49  ;;  %v4088_v52 = vpack.c.bf16 %v3403_v50, %v3403_v50  ;;  %v4094_v35 = vpack.c.bf16 %v3409_v53, %v3409_v53  ;;  %v4096_v61 = vpack.c.bf16 %v3408_v54, %v3408_v54 }
 0xb82   :  { %v3412_v28 = vpop.permute.xlu1 %3411  ;;  %v1575_v6 = vpop.permute.xlu0 %1574 }
 0xb83   :  { %1623 = vrot.lane.b32.xlu1 %v4088_v52, %s3606_s13  ;;  %1672 = vrot.lane.b32.xlu0 %v4086_v60, %s3606_s13  ;;  %v3414_v38 = vunpack.i.h.bf16 %v3412_v28  ;;  %v3413_v57 = vunpack.i.l.bf16 %v3412_v28  ;;  %v1580_v7 = vsel %vm179_vm2, %v1575_v6, 0 }
 0xb85   :  { %v4103_v63 = vpack.c.bf16 %v3414_v38, %v3414_v38  ;;  %v4105_v5 = vpack.c.bf16 %v3413_v57, %v3413_v57 }
 0xb86   :  { %v1526_v58 = vpop.permute.xlu1 %1525 }
 0xb87   :  { %v1531_v59 = vsel %vm179_vm2, %v1526_v58, 0  ;;  %1721 = vrot.lane.b32.xlu1 %v4096_v61, %s3606_s13  ;;  %1770 = vrot.lane.b32.xlu0 %v4094_v35, %s3606_s13 }
 0xb88   :  { %3218 = vmatpush3.bf16.xpose.msra.mxu0 %v1531_v59 }
 0xb89   :  { %3223 = vmatprep.subr.bf16.mxu0 %v3601_v9 }
 0xb8b   :  { %1819 = vrot.lane.b32.xlu1 %v4105_v5, %s3606_s13  ;;  %1868 = vrot.lane.b32.xlu0 %v4103_v63, %s3606_s13 }
 0xb8f   :  { %3220 = vmatmul.mubr.msk.bf16.vlgmr.msra.gmra.mrb[40].mxu0 %vm179_vm2, %v1516_v46  ;;  %2028 = vrot.lane.b32.xlu1 %v1516_v46, %s3607_s14 }
 0xb90   :  { %3224 = vmatpush3.bf16.xpose.msra.mxu0 %v1580_v7  ;;  %3225 = vmatprep.mubr.msk.bf16.mxu0 %vm3602_vm1, %v3601_v9 }
 0xb91   :  { %3229 = vmatprep.subr.bf16.mxu0 %v3601_v9 }
 0xb97   :  { %3226 = vmatmul.mubr.msk.bf16.vlgmr.msra.gmra.mrb[44].mxu0 %vm179_vm2, %v4080_v8 }
 0xb98   :  { %3231 = vmatprep.mubr.msk.bf16.mxu0 %vm3602_vm1, %v3601_v9 }
 0xbf5   :  { %v1624_v11 = vpop.permute.xlu1 %1623  ;;  %v1673_v14 = vpop.permute.xlu0 %1672 }
 0xbf6   :  { %v1629_v4 = vsel %vm179_vm2, %v1624_v11, 0  ;;  %v1678_v10 = vsel %vm179_vm2, %v1673_v14, 0 }
 0xbf7   :  { %3230 = vmatpush3.bf16.xpose.msra.mxu0 %v1629_v4  ;;  %3236 = vmatpush3.bf16.xpose.msra.mxu1 %v1678_v10 }
 0xbf8   :  { %3241 = vmatprep.subr.bf16.mxu0 %v3601_v9  ;;  %3247 = vmatprep.subr.bf16.mxu1 %v3601_v9 }
 0xbf9   :  { %v1722_v15 = vpop.permute.xlu1 %1721  ;;  %v1771_v62 = vpop.permute.xlu0 %1770 }
 0xbfa   :  { %v1727_v16 = vsel %vm179_vm2, %v1722_v15, 0  ;;  %v1776_v17 = vsel %vm179_vm2, %v1771_v62, 0 }
 0xbfd   :  { %v1820_v19 = vpop.permute.xlu1 %1819  ;;  %v1869_v20 = vpop.permute.xlu0 %1868 }
 0xbfe   :  { %3232 = vmatmul.mubr.msk.bf16.vlgmr.msra.gmra.mrb[48].mxu0 %vm179_vm2, %v4088_v52  ;;  %3238 = vmatmul.mubr.msk.bf16.vlgmr.msra.gmra.mrb[44].mxu1 %vm179_vm2, %v4086_v60  ;;  %v1825_v22 = vsel %vm179_vm2, %v1820_v19, 0  ;;  %v1874_v25 = vsel %vm179_vm2, %v1869_v20, 0 }
 0xbff   :  { %3242 = vmatpush3.bf16.xpose.msra.mxu0 %v1727_v16  ;;  %3248 = vmatpush3.bf16.xpose.msra.mxu1 %v1776_v17 }
 0xc00   :  { %3243 = vmatprep.mubr.msk.bf16.mxu0 %vm3602_vm1, %v3601_v9  ;;  %3249 = vmatprep.mubr.msk.bf16.mxu1 %vm3602_vm1, %v3601_v9 }
 0xc01   :  { %3253 = vmatprep.subr.bf16.mxu0 %v3601_v9  ;;  %3259 = vmatprep.subr.bf16.mxu1 %v3601_v9  ;;  %v2029_v29 = vpop.permute.xlu1 %2028 }
 0xc02   :  { %v2034_v30 = vsel %vm688_vm3, %v2029_v29, 0 }
 0xc06   :  { %3244 = vmatmul.mubr.msk.bf16.vlgmr.msra.gmra.mrb[52].mxu0 %vm179_vm2, %v4096_v61  ;;  %3250 = vmatmul.mubr.msk.bf16.vlgmr.msra.gmra.mrb[48].mxu1 %vm179_vm2, %v4094_v35 }
 0xc07   :  { %3254 = vmatpush3.bf16.xpose.msra.mxu0 %v1825_v22  ;;  %3260 = vmatpush3.bf16.xpose.msra.mxu1 %v1874_v25 }
 0xc08   :  { %3255 = vmatprep.mubr.msk.bf16.mxu0 %vm3602_vm1, %v3601_v9  ;;  %3261 = vmatprep.mubr.msk.bf16.mxu1 %vm3602_vm1, %v3601_v9 }
 0xc09   :  { %3265 = vmatprep.subr.bf16.mxu0 %v3601_v9  ;;  %3271 = vmatprep.subr.bf16.mxu1 %v3601_v9 }
 0xc0e   :  { %3256 = vmatmul.mubr.msk.bf16.vlgmr.msra.gmra.mrb[56].mxu0 %vm179_vm2, %v4105_v5  ;;  %3262 = vmatmul.mubr.msk.bf16.vlgmr.msra.gmra.mrb[52].mxu1 %vm179_vm2, %v4103_v63 }
 0xc0f   :  { %3266 = vmatpush3.bf16.msra.mxu0 %v2034_v30  ;;  %3273 = vmatprep.mubr.msk.bf16.mxu1 %vm3602_vm1, %v3601_v9 }
 0xc10   :  { %3267 = vmatprep.mubr.msk.bf16.mxu0 %vm3602_vm1, %v3601_v9  ;;  %3277 = vmatprep.subr.bf16.mxu0 %v3601_v9 }
 0xc62   :  { %v1567_v31 = vpop.f32.mrb[40].mxu0 }
 0xc63   :  { %v1916_v32 = vmul.f32 0.35355338, %v1567_v31  ;;  %v3221_v36 = vpop.f32.mrb[41].mxu0 }
 0xc64   :  { %v1570_v37 = vpop.f32.mrb[42].mxu0 }
 0xc65   :  { %v3222_v3 = vpop.f32.mrb[43].mxu0  ;;  %v4162_v39 = vsel %vm3802_vm4, %v1916_v32, -3.4028235e+38 }
 0xc66   :  { %v1932_v13 = vsel %vm179_vm2, %v4162_v39, -inf }
 0xc67   :  { %1933 = vmax.xlane.f32.xlu1 %v1932_v13 }
 0xc6a   :  { %v1616_v0 = vpop.f32.mrb[44].mxu0 }
 0xc6b   :  { %v1917_v21 = vmul.f32 0.35355338, %v1616_v0  ;;  %v3227_v1 = vpop.f32.mrb[45].mxu0 }
 0xc6c   :  { %v1619_v40 = vpop.f32.mrb[46].mxu0 }
 0xc6d   :  { %v3228_v42 = vpop.f32.mrb[47].mxu0  ;;  %v1925_v44 = vsel %vm3802_vm4, %v1917_v21, -3.4028235e+38 }
 0xc6e   :  { %v1935_v23 = vsel %vm179_vm2, %v1925_v44, -inf }
 0xc6f   :  { %1936 = vmax.xlane.f32.xlu0 %v1935_v23 }
 0xcd1   :  { %v1665_v46 = vpop.f32.mrb[48].mxu0  ;;  %v1714_v43 = vpop.f32.mrb[44].mxu1 }
 0xcd2   :  { %v1918_v48 = vmul.f32 0.35355338, %v1665_v46  ;;  %v1919_v49 = vmul.f32 0.35355338, %v1714_v43  ;;  %v3233_v50 = vpop.f32.mrb[49].mxu0  ;;  %v3239_v53 = vpop.f32.mrb[45].mxu1 }
 0xcd3   :  { %v1668_v54 = vpop.f32.mrb[50].mxu0  ;;  %v1717_v28 = vpop.f32.mrb[46].mxu1 }
 0xcd4   :  { %v3234_v38 = vpop.f32.mrb[51].mxu0  ;;  %v3240_v57 = vpop.f32.mrb[47].mxu1  ;;  %v1926_v58 = vsel %vm3802_vm4, %v1918_v48, -3.4028235e+38  ;;  %v1927_v6 = vsel %vm3802_vm4, %v1919_v49, -3.4028235e+38 }
 0xcd5   :  { %v1938_v59 = vsel %vm179_vm2, %v1926_v58, -inf  ;;  %v1941_v14 = vsel %vm179_vm2, %v1927_v6, -inf }
 0xcd6   :  { %1939 = vmax.xlane.f32.xlu0 %v1938_v59 }
 0xcd9   :  { %v1763_v7 = vpop.f32.mrb[52].mxu0  ;;  %v1812_v11 = vpop.f32.mrb[48].mxu1 }
 0xcda   :  { %v1920_v4 = vmul.f32 0.35355338, %v1763_v7  ;;  %v1921_v10 = vmul.f32 0.35355338, %v1812_v11  ;;  %v3245_v15 = vpop.f32.mrb[53].mxu0  ;;  %1942 = vmax.xlane.f32.xlu0 %v1941_v14  ;;  %v3251_v62 = vpop.f32.mrb[49].mxu1 }
 0xcdb   :  { %v1766_v16 = vpop.f32.mrb[54].mxu0  ;;  %v1815_v17 = vpop.f32.mrb[50].mxu1 }
 0xcdc   :  { %v3246_v19 = vpop.f32.mrb[55].mxu0  ;;  %v3252_v20 = vpop.f32.mrb[51].mxu1  ;;  %v1928_v22 = vsel %vm3802_vm4, %v1920_v4, -3.4028235e+38  ;;  %v4179_v25 = vsel %vm3802_vm4, %v1921_v10, -3.4028235e+38 }
 0xcdd   :  { %v1944_v29 = vsel %vm179_vm2, %v1928_v22, -inf  ;;  %v1947_v30 = vsel %vm179_vm2, %v4179_v25, -inf }
 0xcde   :  { %1945 = vmax.xlane.f32.xlu1 %v1944_v29  ;;  %1948 = vmax.xlane.f32.xlu0 %v1947_v30 }
 0xce1   :  { %v1861_v31 = vpop.f32.mrb[56].mxu0  ;;  %v1910_v32 = vpop.f32.mrb[52].mxu1 }
 0xce2   :  { %v1922_v36 = vmul.f32 0.35355338, %v1861_v31  ;;  %v1923_v37 = vmul.f32 0.35355338, %v1910_v32  ;;  %v3257_v3 = vpop.f32.mrb[57].mxu0  ;;  %v3263_v13 = vpop.f32.mrb[53].mxu1 }
 0xce3   :  { %v1864_v0 = vpop.f32.mrb[58].mxu0  ;;  %v1913_v21 = vpop.f32.mrb[54].mxu1 }
 0xce4   :  { %v3258_v1 = vpop.f32.mrb[59].mxu0  ;;  %v3264_v40 = vpop.f32.mrb[55].mxu1  ;;  %v1930_v42 = vsel %vm3802_vm4, %v1922_v36, -3.4028235e+38  ;;  %v4188_v23 = vsel %vm3802_vm4, %v1923_v37, -3.4028235e+38 }
 0xce5   :  { %v1950_v46 = vsel %vm179_vm2, %v1930_v42, -inf  ;;  %v1953_v43 = vsel %vm179_vm2, %v4188_v23, -inf }
 0xce6   :  { %1951 = vmax.xlane.f32.xlu1 %v1950_v46  ;;  %1954 = vmax.xlane.f32.xlu0 %v1953_v43 }
 0xcf4   :  { %v1934_v49 = vpop.xlane.xlu1 %1933 }
 0xcf5   :  { %v1956_v50 = vsub.f32 %v4162_v39, %v1934_v49 }
 0xcf7   :  { %2124 = vrot.lane.b32.xlu1 %v4088_v52, %s3607_s14  ;;  %v1964_v54 = vmul.f32 1.442695, %v1956_v50 }
 0xcfb   :  { %2172 = vrot.lane.b32.xlu1 %v4086_v60, %s3607_s14 }
 0xcfc   :  { %2076 = vrot.lane.b32.xlu0 %v4080_v8, %s3607_s14  ;;  %v1937_v48 = vpop.xlane.xlu0 %1936 }
 0xcfd   :  { %v1957_v34 = vsub.f32 %v1925_v44, %v1937_v48 }
 0xcff   :  { %v1966_v53 = vmul.f32 1.442695, %v1957_v34 }
 0xd01   :  { %3512 = vpow2.f32 %v1966_v53 }
 0xd02   :  { %3514 = vpow2.f32 %v1964_v54 }
 0xd0b   :  { %v4200_v28 = vpop.eup %3512 }
 0xd0c   :  { %v1983_v52 = vsel %vm179_vm2, %v4200_v28, 0.0  ;;  %v4204_v38 = vpop.eup %3514 }
 0xd0d   :  { %v1980_v8 = vsel %vm179_vm2, %v4204_v38, 0.0 }
 0xd1b   :  { %1984 = vadd.xlane.f32.xlu0 %v1983_v52 }
 0xd1f   :  { %1981 = vadd.xlane.f32.xlu1 %v1980_v8 }
 0xd30   :  { %2220 = vrot.lane.b32.xlu1 %v4096_v61, %s3607_s14 }
 0xd63   :  { %v1940_v60 = vpop.xlane.xlu0 %1939 }
 0xd64   :  { %v1958_v39 = vsub.f32 %v1926_v58, %v1940_v60 }
 0xd66   :  { %v1968_v44 = vmul.f32 1.442695, %v1958_v39 }
 0xd67   :  { %v1943_v57 = vpop.xlane.xlu0 %1942 }
 0xd68   :  { %3516 = vpow2.f32 %v1968_v44  ;;  %v1959_v59 = vsub.f32 %v1927_v6, %v1943_v57 }
 0xd6a   :  { %v1970_v7 = vmul.f32 1.442695, %v1959_v59 }
 0xd6b   :  { %v1946_v11 = vpop.xlane.xlu1 %1945  ;;  %v1949_v10 = vpop.xlane.xlu0 %1948 }
 0xd6c   :  { %3518 = vpow2.f32 %v1970_v7  ;;  %v1960_v14 = vsub.f32 %v1928_v22, %v1946_v11  ;;  %v1961_v36 = vsub.f32 %v4179_v25, %v1949_v10 }
 0xd6e   :  { %v1972_v4 = vmul.f32 1.442695, %v1960_v14  ;;  %v1974_v37 = vmul.f32 1.442695, %v1961_v36 }
 0xd70   :  { %3520 = vpow2.f32 %v1972_v4 }
 0xd72   :  { %v4210_v15 = vpop.eup %3516 }
 0xd73   :  { %v1952_v62 = vpop.xlane.xlu1 %1951  ;;  %v1955_v16 = vpop.xlane.xlu0 %1954  ;;  %v1986_v61 = vsel %vm179_vm2, %v4210_v15, 0.0 }
 0xd74   :  { %v1962_v17 = vsub.f32 %v1930_v42, %v1952_v62  ;;  %1987 = vadd.xlane.f32.xlu1 %v1986_v61  ;;  %v1963_v3 = vsub.f32 %v4188_v23, %v1955_v16 }
 0xd76   :  { %v4214_v58 = vpop.eup %3518  ;;  %v1976_v19 = vmul.f32 1.442695, %v1962_v17  ;;  %v1978_v13 = vmul.f32 1.442695, %v1963_v3 }
 0xd77   :  { %v2077_v6 = vpop.permute.xlu0 %2076  ;;  %v1989_v20 = vsel %vm179_vm2, %v4214_v58, 0.0  ;;  %v2125_v0 = vpop.permute.xlu1 %2124 }
 0xd78   :  { %3522 = vpow2.f32 %v1976_v19  ;;  %v2082_v22 = vsel %vm688_vm3, %v2077_v6, 0  ;;  %1990 = vadd.xlane.f32.xlu0 %v1989_v20  ;;  %v2130_v50 = vsel %vm688_vm3, %v2125_v0, 0 }
 0xd79   :  { %3272 = vmatpush3.bf16.msra.mxu1 %v2082_v22  ;;  %3524 = vpow2.f32 %v1974_v37 }
 0xd7a   :  { %v4219_v29 = vpop.eup %3520  ;;  %3283 = vmatprep.subr.bf16.mxu1 %v3601_v9  ;;  %3526 = vpow2.f32 %v1978_v13 }
 0xd7b   :  { %v1992_v30 = vsel %vm179_vm2, %v4219_v29, 0.0  ;;  %v2173_v21 = vpop.permute.xlu1 %2172 }
 0xd7c   :  { %1993 = vadd.xlane.f32.xlu1 %v1992_v30  ;;  %v2178_v48 = vsel %vm688_vm3, %v2173_v21, 0 }
 0xd82   :  { %v4224_v31 = vpop.eup %3522 }
 0xd83   :  { %v1998_v32 = vsel %vm179_vm2, %v4224_v31, 0.0  ;;  %v4236_v40 = vpop.eup %3524 }
 0xd84   :  { %1999 = vadd.xlane.f32.xlu1 %v1998_v32  ;;  %v4240_v25 = vpop.eup %3526 }
 0xd8e   :  { %2268 = vrot.lane.b32.xlu0 %v4094_v35, %s3607_s14 }
 0xd95   :  { %2316 = vrot.lane.b32.xlu1 %v4105_v5, %s3607_s14  ;;  %v1995_v5 = vsel %vm179_vm2, %v4236_v40, 0.0 }
 0xd99   :  { %2443 = vrot.lane.b32.xlu1 %v4050_v41, %s3608_s19  ;;  %v2001_v41 = vsel %vm179_vm2, %v4240_v25, 0.0 }
 0xda8   :  { %v1985_v1 = vpop.xlane.xlu0 %1984 }
 0xda9   :  { %3528 = vrcp.f32 %v1985_v1 }
 0xdac   :  { %v1982_v35 = vpop.xlane.xlu1 %1981 }
 0xdad   :  { %3530 = vrcp.f32 %v1982_v35  ;;  %1996 = vadd.xlane.f32.xlu0 %v1995_v5 }
 0xdb0   :  { %v2221_v53 = vpop.permute.xlu1 %2220 }
 0xdb1   :  { %2002 = vadd.xlane.f32.xlu0 %v2001_v41  ;;  %v2226_v44 = vsel %vm688_vm3, %v2221_v53, 0 }
 0xdb3   :  { %v3529_v42 = vpop.eup %3528 }
 0xdb4   :  { %v2013_v23 = vmul.f32 %v3529_v42, %v4200_v28 }
 0xdb6   :  { %v2021_v46 = vpack.c.bf16 %v2013_v23, %v2013_v23 }
 0xdb7   :  { %v3531_v43 = vpop.eup %3530 }
 0xdb8   :  { %v2012_v34 = vmul.f32 %v3531_v43, %v4204_v38  ;;  %3274 = vmatmul.mubr.msk.bf16.vlgmr.msra.gmra.mrb[56].mxu1 %vm179_vm2, %v2021_v46 }
 0xdb9   :  { %3284 = vmatpush3.bf16.msra.mxu1 %v2178_v48  ;;  %3285 = vmatprep.mubr.msk.bf16.mxu1 %vm3602_vm1, %v3601_v9 }
 0xdba   :  { %v2020_v49 = vpack.c.bf16 %v2012_v34, %v2012_v34  ;;  %3295 = vmatprep.subr.bf16.mxu1 %v3601_v9 }
 0xdbc   :  { %3268 = vmatmul.mubr.msk.bf16.vlgmr.msra.gmra.mrb[60].mxu0 %vm179_vm2, %v2020_v49 }
 0xdbd   :  { %3278 = vmatpush3.bf16.msra.mxu0 %v2130_v50  ;;  %3279 = vmatprep.mubr.msk.bf16.mxu0 %vm3602_vm1, %v3601_v9 }
 0xdbe   :  { %3289 = vmatprep.subr.bf16.mxu0 %v3601_v9 }
 0xdc7   :  { %2364 = vrot.lane.b32.xlu0 %v4103_v63, %s3607_s14 }
 0xe01   :  { %v1988_v54 = vpop.xlane.xlu1 %1987 }
 0xe02   :  { %3532 = vrcp.f32 %v1988_v54 }
 0xe05   :  { %v1991_v28 = vpop.xlane.xlu0 %1990 }
 0xe06   :  { %3534 = vrcp.f32 %v1991_v28 }
 0xe09   :  { %v1994_v52 = vpop.xlane.xlu1 %1993  ;;  %v2269_v63 = vpop.permute.xlu0 %2268 }
 0xe0a   :  { %3536 = vrcp.f32 %v1994_v52  ;;  %v2274_v4 = vsel %vm688_vm3, %v2269_v63, 0 }
 0xe0c   :  { %v3533_v38 = vpop.eup %3532 }
 0xe0d   :  { %v2014_v8 = vmul.f32 %v3533_v38, %v4210_v15 }
 0xe0f   :  { %v2022_v60 = vpack.c.bf16 %v2014_v8, %v2014_v8 }
 0xe10   :  { %v3535_v39 = vpop.eup %3534 }
 0xe11   :  { %v2015_v57 = vmul.f32 %v3535_v39, %v4214_v58  ;;  %3280 = vmatmul.mubr.msk.bf16.vlgmr.msra.gmra.mrb[64].mxu0 %vm179_vm2, %v2022_v60  ;;  %v2000_v59 = vpop.xlane.xlu1 %1999 }
 0xe12   :  { %3290 = vmatpush3.bf16.msra.mxu0 %v2226_v44  ;;  %3538 = vrcp.f32 %v2000_v59  ;;  %3291 = vmatprep.mubr.msk.bf16.mxu0 %vm3602_vm1, %v3601_v9 }
 0xe13   :  { %v2023_v7 = vpack.c.bf16 %v2015_v57, %v2015_v57  ;;  %3301 = vmatprep.subr.bf16.mxu0 %v3601_v9 }
 0xe14   :  { %v3537_v11 = vpop.eup %3536 }
 0xe15   :  { %v2016_v14 = vmul.f32 %v3537_v11, %v4219_v29  ;;  %3286 = vmatmul.mubr.msk.bf16.vlgmr.msra.gmra.mrb[60].mxu1 %vm179_vm2, %v2023_v7  ;;  %v2317_v10 = vpop.permute.xlu1 %2316 }
 0xe16   :  { %3296 = vmatpush3.bf16.msra.mxu1 %v2274_v4  ;;  %3297 = vmatprep.mubr.msk.bf16.mxu1 %vm3602_vm1, %v3601_v9  ;;  %v2322_v62 = vsel %vm688_vm3, %v2317_v10, 0 }
 0xe17   :  { %v2024_v15 = vpack.c.bf16 %v2016_v14, %v2016_v14  ;;  %3307 = vmatprep.subr.bf16.mxu1 %v3601_v9 }
 0xe19   :  { %3292 = vmatmul.mubr.msk.bf16.vlgmr.msra.gmra.mrb[68].mxu0 %vm179_vm2, %v2024_v15  ;;  %v2444_v5 = vpop.permute.xlu1 %2443 }
 0xe1a   :  { %3302 = vmatpush3.bf16.msra.mxu0 %v2322_v62  ;;  %3303 = vmatprep.mubr.msk.bf16.mxu0 %vm3602_vm1, %v3601_v9 }
 0xe1b   :  { %3313 = vmatprep.subr.bf16.mxu0 %v3601_v9 }
 0xe1c   :  { %v3539_v16 = vpop.eup %3538 }
 0xe1d   :  { %v2018_v61 = vmul.f32 %v3539_v16, %v4224_v31 }
 0xe1f   :  { %v2026_v17 = vpack.c.bf16 %v2018_v61, %v2018_v61 }
 0xe21   :  { %3304 = vmatmul.mubr.msk.bf16.vlgmr.msra.gmra.mrb[72].mxu0 %vm179_vm2, %v2026_v17 }
 0xe22   :  { %3317 = vmatprep.mubr.msk.bf16.mxu0 %vm3602_vm1, %v3601_v9  ;;  %3314 = vmatpush3.bf16.msra.mxu0 %v2444_v5 }
 0xe23   :  { %3315 = vmatprep.subr.bf16.mxu0 %v3601_v9 }
 0xe3a   :  { %v1997_v58 = vpop.xlane.xlu0 %1996 }
 0xe3b   :  { %3540 = vrcp.f32 %v1997_v58 }
 0xe3e   :  { %v2003_v19 = vpop.xlane.xlu0 %2002 }
 0xe3f   :  { %3542 = vrcp.f32 %v2003_v19 }
 0xe42   :  { %v2365_v22 = vpop.permute.xlu0 %2364 }
 0xe43   :  { %v2370_v32 = vsel %vm688_vm3, %v2365_v22, 0 }
 0xe45   :  { %v3541_v6 = vpop.eup %3540 }
 0xe46   :  { %v2017_v20 = vmul.f32 %v3541_v6, %v4236_v40 }
 0xe48   :  { %v2025_v29 = vpack.c.bf16 %v2017_v20, %v2017_v20 }
 0xe49   :  { %v3543_v30 = vpop.eup %3542 }
 0xe4a   :  { %3298 = vmatmul.mubr.msk.bf16.vlgmr.msra.gmra.mrb[64].mxu1 %vm179_vm2, %v2025_v29  ;;  %v2019_v31 = vmul.f32 %v3543_v30, %v4240_v25 }
 0xe4b   :  { %3308 = vmatpush3.bf16.msra.mxu1 %v2370_v32  ;;  %3309 = vmatprep.mubr.msk.bf16.mxu1 %vm3602_vm1, %v3601_v9 }
 0xe4c   :  { %3321 = vmatprep.subr.bf16.mxu1 %v3601_v9  ;;  %v2027_v36 = vpack.c.bf16 %v2019_v31, %v2019_v31 }
 0xe52   :  { %3310 = vmatmul.mubr.msk.bf16.vlgmr.msra.gmra.mrb[68].mxu1 %vm179_vm2, %v2027_v36 }
 0xe53   :  { %3325 = vmatprep.mubr.msk.bf16.mxu1 %vm3602_vm1, %v3601_v9 }
 0xe8b   :  { %v2118_v37 = vpop.f32.mrb[56].mxu1 }
 0xe8c   :  { %v3275_v3 = vpop.f32.mrb[57].mxu1 }
 0xe8d   :  { %v2121_v13 = vpop.f32.mrb[58].mxu1 }
 0xe8e   :  { %v3276_v0 = vpop.f32.mrb[59].mxu1 }
 0xe8f   :  { %v2070_v21 = vpop.f32.mrb[60].mxu0 }
 0xe90   :  { %v3269_v1 = vpop.f32.mrb[61].mxu0 }
 0xe91   :  { %v2073_v40 = vpop.f32.mrb[62].mxu0 }
 0xe92   :  { %v3270_v35 = vpop.f32.mrb[63].mxu0 }
 0xee4   :  { %v2166_v25 = vpop.f32.mrb[64].mxu0 }
 0xee5   :  { %v3281_v41 = vpop.f32.mrb[65].mxu0 }
 0xee6   :  { %v2169_v42 = vpop.f32.mrb[66].mxu0 }
 0xee7   :  { %v3282_v23 = vpop.f32.mrb[67].mxu0 }
 0xee8   :  { %v2214_v46 = vpop.f32.mrb[60].mxu1 }
 0xee9   :  { %v3415_v43 = vpack.i.bf16 %v2214_v46, %v2166_v25  ;;  %v3287_v48 = vpop.f32.mrb[61].mxu1  ;;  %v3448_v46 = vld [vmem:[%s4418_s2 + $0x24] ss:$8 sps:$4 sm:$0xff]  }
 0xeea   :  { %v2217_v34 = vpop.f32.mrb[62].mxu1  ;;  %3322 = vmatpush3.bf16.msra.mxu1 %v3448_v46 }
 0xeeb   :  { %3416 = vrot.lane.b32.xlu0 %v3415_v43, %s3609_s20  ;;  %v3288_v49 = vpop.f32.mrb[63].mxu1  ;;  %v3449_v43 = vld [vmem:[%s4418_s2 + $0x34] ss:$8 sps:$4 sm:$0xff]   ;;  %3323 = vmatprep.subr.bf16.mxu1 %v3601_v9 }
 0xeec   :  { %v2262_v50 = vpop.f32.mrb[68].mxu0 }
 0xeed   :  { %v3293_v53 = vpop.f32.mrb[69].mxu0 }
 0xeee   :  { %v2265_v54 = vpop.f32.mrb[70].mxu0  ;;  %3324 = vmatpush3.bf16.msra.mxu1 %v3449_v43  ;;  %v2728_v43 = vrot.slane %v4064_v2, %v1384_v45 }
 0xeef   :  { %v3294_v28 = vpop.f32.mrb[71].mxu0  ;;  %3349 = vmatprep.subr.bf16.mxu1 %v3601_v9 }
 0xef4   :  { %v2358_v52 = vpop.f32.mrb[72].mxu0 }
 0xef5   :  { %v3305_v38 = vpop.f32.mrb[73].mxu0 }
 0xef6   :  { %v2361_v8 = vpop.f32.mrb[74].mxu0 }
 0xef7   :  { %v3306_v60 = vpop.f32.mrb[75].mxu0 }
 0xf1d   :  { %v2310_v39 = vpop.f32.mrb[64].mxu1 }
 0xf1e   :  { %v3420_v44 = vpack.i.bf16 %v2310_v39, %v2262_v50  ;;  %v3299_v57 = vpop.f32.mrb[65].mxu1 }
 0xf1f   :  { %v2313_v59 = vpop.f32.mrb[66].mxu1 }
 0xf20   :  { %3421 = vrot.lane.b32.xlu1 %v3420_v44, %s3610_s21  ;;  %v3300_v63 = vpop.f32.mrb[67].mxu1 }
 0xf24   :  { %2445 = vrot.lane.b32.xlu1 %v4056_v47, %s3608_s19 }
 0xf25   :  { %v2406_v7 = vpop.f32.mrb[68].mxu1 }
 0xf26   :  { %v3425_v11 = vpack.i.bf16 %v2406_v7, %v2358_v52  ;;  %v3311_v14 = vpop.f32.mrb[69].mxu1 }
 0xf27   :  { %v2409_v4 = vpop.f32.mrb[70].mxu1 }
 0xf28   :  { %3426 = vrot.lane.b32.xlu0 %v3425_v11, %s3611_s22  ;;  %v3312_v10 = vpop.f32.mrb[71].mxu1  ;;  %v2534_v11 = vrot.slane %v4064_v2, %v1191_v56  ;;  %v3450_v56 = vld [vmem:[%s4419_s3 + $0x40] sm:$0xff]  }
 0xf5d   :  { %v3417_v62 = vpop.permute.xlu0 %3416 }
 0xf5e   :  { %v3419_v61 = vunpack.i.h.bf16 %v3417_v62  ;;  %v3418_v17 = vunpack.i.l.bf16 %v3417_v62  ;;  %v2540_v62 = vrot.slane %v4064_v2, %v1197_v12  ;;  %v3451_v12 = vld [vmem:[%s4419_s3 + $0x48] sm:$0xff]  }
 0xf60   :  { %v2437_v47 = vsel %vm179_vm2, %v2118_v37, %v3419_v61  ;;  %v2436_v20 = vsel %vm179_vm2, %v2070_v21, %v3418_v17  ;;  %v2498_v37 = vrot.slane %v4064_v2, %v1155_v24 }
 0xf92   :  { %v3422_v15 = vpop.permute.xlu1 %3421 }
 0xf93   :  { %v3424_v58 = vunpack.i.h.bf16 %v3422_v15  ;;  %v3423_v19 = vunpack.i.l.bf16 %v3422_v15 }
 0xf95   :  { %v2439_v30 = vsel %vm1094_vm5, %v2437_v47, %v3424_v58  ;;  %v2438_v32 = vsel %vm1094_vm5, %v2436_v20, %v3423_v19  ;;  %v3452_v19 = vld [vmem:[%s4419_s3 + $0x50] sm:$0xff]   ;;  %v3454_v47 = vld [vmem:[%s4419_s3 + $0x60] sm:$0xff]   ;;  %v3455_v20 = vld [vmem:[%s4419_s3 + $0x68] sm:$0xff]  }
 0xf96   :  { %v2446_v16 = vpop.permute.xlu1 %2445 }
 0xf97   :  { %3316 = vmatpush3.bf16.msra.mxu0 %v2446_v16 }
 0xf98   :  { %3329 = vmatprep.subr.bf16.mxu0 %v3601_v9 }
 0xf9a   :  { %v3427_v6 = vpop.permute.xlu0 %3426 }
 0xf9b   :  { %v3429_v22 = vunpack.i.h.bf16 %v3427_v6  ;;  %v3428_v29 = vunpack.i.l.bf16 %v3427_v6  ;;  %v3453_v6 = vld [vmem:[%s4419_s3 + $0x58] sm:$0xff]  }
 0xf9d   :  { %v2441_v31 = vsel %vm1097_vm6, %v2439_v30, %v3429_v22  ;;  %v2440_v36 = vsel %vm1097_vm6, %v2438_v32, %v3428_v29  ;;  %v3456_v22 = vld [vmem:[%s4419_s3 + $0x70] sm:$0xff]   ;;  %v3457_v29 = vld [vmem:[%s4419_s3 + $0x78] sm:$0xff]   ;;  %v2547_v30 = vrot.slane %v4064_v2, %v1204_v18  ;;  %v3458_v2 = vld [vmem:[%s4420_s4] sm:$0xff]  }
 0xf9e   :  { %v2442_v3 = vpack.c.bf16 %v2441_v31, %v2440_v36 }
 0xfa0   :  { %3318 = vmatmul.mubr.msk.bf16.vlgmr.msra.gmra.mrb[76].mxu0 %vm43_vm0, %v2442_v3 }
 0xfa1   :  { %3345 = vmatprep.mubr.msk.bf16.mxu0 %vm3602_vm1, %v3601_v9  ;;  %3330 = vmatpush3.bf16.msra.mxu0 %v3450_v56 }
 0xfa2   :  { %3331 = vmatprep.subr.bf16.mxu0 %v3601_v9 }
 0xfa5   :  { %3332 = vmatpush3.bf16.msra.mxu0 %v3451_v12 }
 0xfa6   :  { %3333 = vmatprep.subr.bf16.mxu0 %v3601_v9 }
 0xfa9   :  { %3334 = vmatpush3.bf16.msra.mxu0 %v3452_v19 }
 0xfaa   :  { %3335 = vmatprep.subr.bf16.mxu0 %v3601_v9 }
 0xfad   :  { %3336 = vmatpush3.bf16.msra.mxu0 %v3453_v6 }
 0xfae   :  { %3337 = vmatprep.subr.bf16.mxu0 %v3601_v9 }
 0xfb1   :  { %3338 = vmatpush3.bf16.msra.mxu0 %v3454_v47 }
 0xfb2   :  { %3339 = vmatprep.subr.bf16.mxu0 %v3601_v9 }
 0xfb5   :  { %3340 = vmatpush3.bf16.msra.mxu0 %v3455_v20 }
 0xfb6   :  { %3341 = vmatprep.subr.bf16.mxu0 %v3601_v9 }
 0xfb9   :  { %3342 = vmatpush3.bf16.msra.mxu0 %v3456_v22 }
 0xfba   :  { %3343 = vmatprep.subr.bf16.mxu0 %v3601_v9 }
 0xfbd   :  { %3344 = vmatpush3.bf16.msra.mxu0 %v3457_v29 }
0x1073   :  { %v2486_v13 = vpop.f32.mrb[76].mxu0 }
0x1074   :  { %v2493_v0 = vadd.f32 %v2486_v13, %v4032_v51  ;;  %v3319_v21 = vpop.f32.mrb[77].mxu0 }
0x1075   :  { %v2489_v1 = vpop.f32.mrb[78].mxu0 }
0x1076   :  { %v4310_v40 = vadd.f32 %v2498_v37, %v2493_v0  ;;  %v2494_v35 = vadd.f32 %v2489_v1, %v4035_v55  ;;  %v3320_v5 = vpop.f32.mrb[79].mxu0 }
0x1078   :  { %v4313_v25 = vadd.f32 %v2498_v37, %v2494_v35  ;;  %v2501_v41 = vsel %vm43_vm0, %v4310_v40, 0.0  ;;  %v2509_v42 = vmul.f32 %v4310_v40, %v4310_v40 }
0x1079   :  { %2502 = vadd.xlane.f32.xlu0 %v2501_v41 }
0x107a   :  { %v2504_v24 = vsel %vm43_vm0, %v4313_v25, 0.0  ;;  %v2511_v51 = vsel %vm43_vm0, %v2509_v42, 0.0  ;;  %v2510_v23 = vmul.f32 %v4313_v25, %v4313_v25 }
0x107b   :  { %2505 = vadd.xlane.f32.xlu1 %v2504_v24 }
0x107c   :  { %v2514_v55 = vsel %vm43_vm0, %v2510_v23, 0.0 }
0x107d   :  { %2512 = vadd.xlane.f32.xlu0 %v2511_v51 }
0x1081   :  { %2515 = vadd.xlane.f32.xlu0 %v2514_v55 }
0x1106   :  { %v2503_v48 = vpop.xlane.xlu0 %2502 }
0x1107   :  { %v2507_v34 = vmul.f32 0.03125, %v2503_v48 }
0x1108   :  { %v2506_v49 = vpop.xlane.xlu1 %2505 }
0x1109   :  { %v2519_v53 = vmul.f32 %v2507_v34, %v2507_v34  ;;  %v2508_v54 = vmul.f32 0.03125, %v2506_v49  ;;  %v2523_v59 = vsub.f32 %v4310_v40, %v2507_v34 }
0x110a   :  { %v2513_v50 = vpop.xlane.xlu0 %2512 }
0x110b   :  { %v2517_v28 = vmul.f32 0.03125, %v2513_v50  ;;  %v2520_v8 = vmul.f32 %v2508_v54, %v2508_v54  ;;  %v2524_v14 = vsub.f32 %v4313_v25, %v2508_v54 }
0x110d   :  { %v2521_v52 = vsub.f32 %v2517_v28, %v2519_v53 }
0x110e   :  { %v2516_v38 = vpop.xlane.xlu0 %2515 }
0x110f   :  { %v2525_v60 = vadd.f32 1e-05, %v2521_v52  ;;  %v2518_v39 = vmul.f32 0.03125, %v2516_v38 }
0x1111   :  { %3544 = vrsqrt.f32 %v2525_v60  ;;  %v2522_v44 = vsub.f32 %v2518_v39, %v2520_v8 }
0x1113   :  { %v2526_v57 = vadd.f32 1e-05, %v2522_v44 }
0x1115   :  { %3546 = vrsqrt.f32 %v2526_v57 }
0x111b   :  { %v3545_v63 = vpop.eup %3544 }
0x111c   :  { %v2529_v7 = vmul.f32 %v3545_v63, %v2523_v59 }
0x111e   :  { %v2535_v15 = vmul.f32 %v2534_v11, %v2529_v7 }
0x111f   :  { %v3547_v4 = vpop.eup %3546 }
0x1120   :  { %v2530_v10 = vmul.f32 %v3547_v4, %v2524_v14  ;;  %v2541_v61 = vadd.f32 %v2540_v62, %v2535_v15 }
0x1122   :  { %v2536_v16 = vmul.f32 %v2534_v11, %v2530_v10 }
0x1124   :  { %v2542_v17 = vadd.f32 %v2540_v62, %v2536_v16 }
0x1126   :  { %v2543_v58 = vpack.c.bf16 %v2542_v17, %v2541_v61 }
0x1128   :  { %3326 = vmatmul.mubr.msk.bf16.vlgmr.msra.gmra.mrb[72].mxu1 %vm43_vm0, %v2543_v58 }
0x1129   :  { %3353 = vmatprep.mubr.msk.bf16.mxu1 %vm3602_vm1, %v3601_v9  ;;  %3350 = vmatpush3.bf16.msra.mxu1 %v3458_v2 }
0x112a   :  { %3351 = vmatprep.subr.bf16.mxu1 %v3601_v9  ;;  %v36_v9 = vld [vmem:[%s4421_s5 + $0x10] sm:$0x3]  ;;  %s2779_s5 = scalar_lea.vmem [#allocation2], %s2962_s25 }
0x112b   :  { %v2764_v58 = vrot.slane %v36_v9, %v3695_v27  ;;  %v2770_v19 = vrot.slane %v36_v9, %v3706_v33 }
0x11fb   :  { %v2593_v32 = vpop.f32.mrb[72].mxu1 }
0x11fc   :  { %v2594_v31 = vadd.f32 %v2593_v32, %v2547_v30  ;;  %v3327_v36 = vpop.f32.mrb[73].mxu1 }
0x11fd   :  { %v2596_v3 = vpop.f32.mrb[74].mxu1 }
0x11fe   :  { %v2936_v37 = vmul.f32 -1.702, %v2594_v31  ;;  %v2597_v13 = vadd.f32 %v2596_v3, %v2547_v30  ;;  %v3328_v0 = vpop.f32.mrb[75].mxu1 }
0x1200   :  { %v2604_v21 = vmul.f32 1.442695, %v2936_v37  ;;  %v2937_v1 = vmul.f32 -1.702, %v2597_v13 }
0x1202   :  { %3548 = vpow2.f32 %v2604_v21  ;;  %v2606_v35 = vmul.f32 1.442695, %v2937_v1 }
0x1204   :  { %3550 = vpow2.f32 %v2606_v35 }
0x120c   :  { %v3549_v5 = vpop.eup %3548 }
0x120d   :  { %v2608_v41 = vadd.f32 1.0, %v3549_v5 }
0x120e   :  { %v3551_v42 = vpop.eup %3550 }
0x120f   :  { %3552 = vrcp.f32 %v2608_v41  ;;  %v2609_v24 = vadd.f32 1.0, %v3551_v42 }
0x1211   :  { %3554 = vrcp.f32 %v2609_v24 }
0x1219   :  { %v3553_v51 = vpop.eup %3552 }
0x121a   :  { %v2614_v23 = vmul.f32 %v3553_v51, %v2594_v31 }
0x121b   :  { %v3555_v18 = vpop.eup %3554 }
0x121c   :  { %v2615_v55 = vmul.f32 %v3555_v18, %v2597_v13 }
0x121e   :  { %v2616_v46 = vpack.c.bf16 %v2615_v55, %v2614_v23 }
0x1220   :  { %3346 = vmatmul.mubr.bf16.vlgmr.msra.gmra.mrb[80].mxu0 %v2616_v46 }
0x12f3   :  { %v2716_v48 = vpop.f32.mrb[80].mxu0 }
0x12f4   :  { %v2723_v34 = vadd.f32 %v2716_v48, %v4310_v40  ;;  %v3347_v49 = vpop.f32.mrb[81].mxu0  ;;  %v3459_v40 = vld [vmem:[%s4420_s4 + $0x8] sm:$0xff]  }
0x12f5   :  { %v2719_v50 = vpop.f32.mrb[82].mxu0  ;;  %3352 = vmatpush3.bf16.msra.mxu1 %v3459_v40 }
0x12f6   :  { %v2729_v53 = vadd.f32 %v2728_v43, %v2723_v34  ;;  %v2724_v54 = vadd.f32 %v2719_v50, %v4313_v25  ;;  %v3348_v28 = vpop.f32.mrb[83].mxu0 }
0x12f8   :  { %v2730_v52 = vadd.f32 %v2728_v43, %v2724_v54  ;;  %v2731_v38 = vsel %vm43_vm0, %v2729_v53, 0.0  ;;  %v2739_v8 = vmul.f32 %v2729_v53, %v2729_v53 }
0x12f9   :  { %2732 = vadd.xlane.f32.xlu0 %v2731_v38 }
0x12fa   :  { %v2734_v60 = vsel %vm43_vm0, %v2730_v52, 0.0  ;;  %v2740_v39 = vmul.f32 %v2730_v52, %v2730_v52  ;;  %v2741_v26 = vsel %vm43_vm0, %v2739_v8, 0.0 }
0x12fb   :  { %2735 = vadd.xlane.f32.xlu1 %v2734_v60 }
0x12fc   :  { %v2744_v45 = vsel %vm43_vm0, %v2740_v39, 0.0 }
0x12fd   :  { %2742 = vadd.xlane.f32.xlu0 %v2741_v26 }
0x12ff   :  { %2745 = vadd.xlane.f32.xlu1 %v2744_v45 }
0x1386   :  { %v2733_v25 = vpop.xlane.xlu0 %2732 }
0x1387   :  { %v2737_v44 = vmul.f32 0.03125, %v2733_v25 }
0x1388   :  { %v2736_v57 = vpop.xlane.xlu1 %2735 }
0x1389   :  { %v2738_v59 = vmul.f32 0.03125, %v2736_v57  ;;  %v2749_v7 = vmul.f32 %v2737_v44, %v2737_v44  ;;  %v2753_v17 = vsub.f32 %v2729_v53, %v2737_v44 }
0x138a   :  { %v2743_v63 = vpop.xlane.xlu0 %2742 }
0x138b   :  { %v2747_v11 = vmul.f32 0.03125, %v2743_v63  ;;  %v2750_v4 = vmul.f32 %v2738_v59, %v2738_v59  ;;  %v2754_v12 = vsub.f32 %v2730_v52, %v2738_v59 }
0x138c   :  { %v2746_v14 = vpop.xlane.xlu1 %2745 }
0x138d   :  { %v2751_v10 = vsub.f32 %v2747_v11, %v2749_v7  ;;  %v2748_v15 = vmul.f32 0.03125, %v2746_v14 }
0x138f   :  { %v2755_v62 = vadd.f32 1e-05, %v2751_v10  ;;  %v2752_v16 = vsub.f32 %v2748_v15, %v2750_v4 }
0x1391   :  { %3556 = vrsqrt.f32 %v2755_v62  ;;  %v2756_v61 = vadd.f32 1e-05, %v2752_v16 }
0x1393   :  { %3558 = vrsqrt.f32 %v2756_v61 }
0x139b   :  { %v3557_v56 = vpop.eup %3556 }
0x139c   :  { %v2759_v6 = vmul.f32 %v3557_v56, %v2753_v17 }
0x139d   :  { %v3559_v47 = vpop.eup %3558 }
0x139e   :  { %v2765_v20 = vmul.f32 %v2764_v58, %v2759_v6  ;;  %v2760_v22 = vmul.f32 %v3559_v47, %v2754_v12 }
0x13a0   :  { %v2771_v29 = vadd.f32 %v2770_v19, %v2765_v20  ;;  %v2766_v30 = vmul.f32 %v2764_v58, %v2760_v22 }
0x13a2   :  { %2773 = vst.msk [vmem:[#allocation2] sm:$0xff] %vm43_vm0, %v2771_v29  ;;  %v2772_v32 = vadd.f32 %v2770_v19, %v2766_v30 }
0x13a4   :  { %2774 = vst.msk [vmem:[#allocation2 + $0x8] sm:$0xff] %vm43_vm0, %v2772_v32 }
0x13ab   :  { %v2780_v31 = vld [vmem:[%s2779_s5] sm:$0x1] }
0x13ac   :  { %v2782_v27 = vrot.slane %v2780_v31, 7  ;;  %v2777_v36 = vld [vmem:[%s2776_s27] sm:$0x1] }
0x13ae   :  { %v2785_v33 = vsel %vm2784_vm7, %v2777_v36, %v2782_v27 }
0x13af   :  { %v2786_v3 = vpack.c.bf16 %v2785_v33, %v2785_v33 }
0x13b1   :  { %3354 = vmatmul.mubr.msk.bf16.vlgmr.msra.gmra.mrb[76].mxu1 %vm43_vm0, %v2786_v3 }
0x1484   :  { %v2840_v37 = vpop.f32.mrb[76].mxu1 }
0x1485   :  { %v2846_v13 = vmul.f32 %v2840_v37, %v2840_v37  ;;  %v3355_v0 = vpop.f32.mrb[77].mxu1 }
0x1486   :  { %v2843_v21 = vpop.f32.mrb[78].mxu1 }
0x1487   :  { %v3356_v1 = vpop.f32.mrb[79].mxu1  ;;  %v2848_v35 = vsel %vm2847_vm8, %v2846_v13, 0.0 }
0x1488   :  { %2849 = vadd.xlane.f32.xlu0 %v2848_v35 }
0x1515   :  { %v2850_v5 = vpop.xlane.xlu0 %2849 }
0x1516   :  { %v2851_v41 = vadd.f32 1e-12, %v2850_v5 }
0x1518   :  { %3560 = vrsqrt.f32 %v2851_v41  ;;  %v2853_v42 = vmul.f32 0.5, %v2851_v41 }
0x1522   :  { %v3561_v24 = vpop.eup %3560 }
0x1523   :  { %v2854_v51 = vmul.f32 %v3561_v24, %v2853_v42 }
0x1525   :  { %v2855_v18 = vmul.f32 %v3561_v24, %v2854_v51 }
0x1527   :  { %v2856_v23 = vsub.f32 1.5, %v2855_v18 }
0x1529   :  { %v2857_v55 = vmul.f32 %v3561_v24, %v2856_v23 }
0x152b   :  { %v2858_v46 = vmul.f32 %v2857_v55, %v2840_v37 }
0x152d   :  { %2859 = vst.msk [vmem:[#allocation5] sm:$0x3] %vm2847_vm8, %v2858_v46 }
0x152e   :  { %3585 = shalt.err (!%p3582_p9)
}
0x152f   :  { %s3586_s14 = scalar_lea.hbm %s4422_s6, 32 }
0x1530   :  { %p3587_p10 = scmp.ne.s32.totalorder %s4422_s6, %s3586_s14  ;;  %p3590_p11 = scmp.lt.u32.totalorder %s3586_s14, %s4422_s6 }
0x1532   :  { %p3592_p12 = pnand %p3590_p11, %p3587_p10 }
0x1534   :  { %3595 = shalt.err (!%p3592_p12)
}
0x1535   :  { %2869 = dma.vmem_to_hbm [thread:$0]  %s2867_s11, 32, %s4422_s6, [#allocation6]  }
0x1536   :  { %3598 = dma.done.wait [#allocation6], 32  }
0x1537   :  { %3599 = vsyncadd [#allocation6], 4294967264 }
0x1538   :  { %2873 = vsyncpa [#allocation6], 1 }

</bundles_post_ra>
